<compile_context>
chip_gen: v6e
topology: v6e:2x2x1
jax: 0.10.0
libtpu: 0.0.40
codegen_flags: <defaults>
</compile_context>

<pallas_src>
import functools

import jax
import jax.numpy as jnp
import numpy as np
from jax.experimental import pallas as pl
from jax.experimental.pallas import tpu as pltpu


# ----------------------------------------------------------------------------
# small helpers
# ----------------------------------------------------------------------------
def _round_up(x, m):
    return ((x + m - 1) // m) * m


def _pick_tile(n, cands):
    for c in cands:
        if n % c == 0:
            return c
    return n


# ----------------------------------------------------------------------------
# Pallas kernels
# ----------------------------------------------------------------------------
def _mm_bn_act_kernel(*refs, relu, has_res):
    """Tiled matmul with fused scale/bias (+residual) (+ReLU) epilogue."""
    if has_res:
        a_ref, b_ref, s_ref, c_ref, r_ref, o_ref, acc_ref = refs
    else:
        a_ref, b_ref, s_ref, c_ref, o_ref, acc_ref = refs
        r_ref = None

    @pl.when(pl.program_id(2) == 0)
    def _init():
        acc_ref[...] = jnp.zeros_like(acc_ref)

    acc_ref[...] += jnp.dot(a_ref[...], b_ref[...],
                            preferred_element_type=jnp.float32)

    @pl.when(pl.program_id(2) == pl.num_programs(2) - 1)
    def _fin():
        r = acc_ref[...] * s_ref[...] + c_ref[...]
        if has_res:
            r = r + r_ref[...].astype(jnp.float32)
        if relu:
            r = jnp.maximum(r, 0.0)
        o_ref[...] = r.astype(o_ref.dtype)


def matmul_scale_bias(A, B, scale, bias, relu, residual=None,
                      out_dtype=jnp.bfloat16):
    """out = act((A @ B) * scale + bias [+ residual]).

    A:(M,K) B:(K,N) scale,bias:(N,) residual:(M,N) or None.
    A/B/residual are streamed in bf16; accumulation and epilogue are f32.
    """
    M, K = A.shape
    _, Nc = B.shape
    Mp = _round_up(M, 8)
    Kp = _round_up(K, 128)
    Np = _round_up(Nc, 128)
    tm = _pick_tile(Mp, (512, 256, 128, 64, 32, 16, 8))
    tk = Kp if Kp <= 1024 else _pick_tile(Kp, (1024, 512, 256, 128))
    tn = Np if Np <= 512 else _pick_tile(Np, (512, 256, 128))

    A_p = jnp.pad(A.astype(jnp.bfloat16), ((0, Mp - M), (0, Kp - K)))
    B_p = jnp.pad(B.astype(jnp.bfloat16), ((0, Kp - K), (0, Np - Nc)))
    s_p = jnp.pad(scale.reshape(1, -1).astype(jnp.float32),
                  ((0, 0), (0, Np - Nc)))
    c_p = jnp.pad(bias.reshape(1, -1).astype(jnp.float32),
                  ((0, 0), (0, Np - Nc)))

    has_res = residual is not None
    inputs = [A_p, B_p, s_p, c_p]
    in_specs = [
        pl.BlockSpec((tm, tk), lambda i, j, k: (i, k)),
        pl.BlockSpec((tk, tn), lambda i, j, k: (k, j)),
        pl.BlockSpec((1, tn), lambda i, j, k: (0, j)),
        pl.BlockSpec((1, tn), lambda i, j, k: (0, j)),
    ]
    if has_res:
        R_p = jnp.pad(residual.astype(jnp.bfloat16),
                      ((0, Mp - M), (0, Np - Nc)))
        inputs.append(R_p)
        in_specs.append(pl.BlockSpec((tm, tn), lambda i, j, k: (i, j)))

    out = pl.pallas_call(
        functools.partial(_mm_bn_act_kernel, relu=relu, has_res=has_res),
        out_shape=jax.ShapeDtypeStruct((Mp, Np), out_dtype),
        grid_spec=pltpu.PrefetchScalarGridSpec(
            num_scalar_prefetch=0,
            grid=(Mp // tm, Np // tn, Kp // tk),
            in_specs=in_specs,
            out_specs=pl.BlockSpec((tm, tn), lambda i, j, k: (i, j)),
            scratch_shapes=[pltpu.VMEM((tm, tn), jnp.float32)],
        ),
        compiler_params=pltpu.CompilerParams(
            dimension_semantics=("parallel", "parallel", "arbitrary"),
            vmem_limit_bytes=32 * 1024 * 1024),
    )(*inputs)
    return out[:M, :Nc]


def _max9_kernel(x_ref, o_ref):
    o_ref[...] = jnp.max(x_ref[...], axis=0)


def maxpool_1_3_3(x):
    """MaxPool3d kernel=(1,3,3), stride=(1,2,2), padding=(0,1,1). x: NTHWC."""
    N, T, H, W, C = x.shape
    oH = (H + 2 - 3) // 2 + 1
    oW = (W + 2 - 3) // 2 + 1
    xp = jnp.pad(x, ((0, 0), (0, 0), (1, 1), (1, 1), (0, 0)),
                 constant_values=-jnp.inf)
    slabs = []
    for dh in range(3):
        for dw in range(3):
            slabs.append(xp[:, :,
                            dh:dh + (oH - 1) * 2 + 1:2,
                            dw:dw + (oW - 1) * 2 + 1:2, :])
    L = N * T * oH * oW * C
    tl = 4096 if L >= 4096 else _round_up(L, 1024)
    Lp = _round_up(L, tl)
    stacked = jnp.stack(slabs, axis=0).reshape(9, L)
    stacked = jnp.pad(stacked, ((0, 0), (0, Lp - L)),
                      constant_values=-jnp.inf)
    Lr, tr = Lp // 128, tl // 128
    stacked = stacked.reshape(9, Lr, 128)

    out = pl.pallas_call(
        _max9_kernel,
        out_shape=jax.ShapeDtypeStruct((Lr, 128), x.dtype),
        grid_spec=pltpu.PrefetchScalarGridSpec(
            num_scalar_prefetch=0,
            grid=(Lr // tr,),
            in_specs=[pl.BlockSpec((9, tr, 128), lambda r: (0, r, 0))],
            out_specs=pl.BlockSpec((tr, 128), lambda r: (r, 0)),
        ),
        compiler_params=pltpu.CompilerParams(
            dimension_semantics=("parallel",),
            vmem_limit_bytes=32 * 1024 * 1024),
    )(stacked)
    return out.reshape(Lp)[:L].reshape(N, T, oH, oW, C)


def _gap_kernel(x_ref, o_ref, acc_ref, *, inv_l):
    @pl.when(pl.program_id(0) == 0)
    def _init():
        acc_ref[...] = jnp.zeros_like(acc_ref)

    acc_ref[...] += jnp.sum(x_ref[...].astype(jnp.float32), axis=1)

    @pl.when(pl.program_id(0) == pl.num_programs(0) - 1)
    def _fin():
        o_ref[...] = (acc_ref[...] * inv_l).astype(o_ref.dtype)


def global_avg_pool(x):
    """AdaptiveAvgPool3d(1) + flatten: (N,T,H,W,C) -> (N,C) in f32."""
    N, T, H, W, C = x.shape
    L = T * H * W
    Np8 = _round_up(N, 8)
    Cp = _round_up(C, 128)
    tl = _pick_tile(_round_up(L, 8), (512, 256, 128, 64, 32, 16, 8))
    Lp = _round_up(L, tl)
    x2 = x.reshape(N, L, C)
    x2 = jnp.pad(x2, ((0, Np8 - N), (0, Lp - L), (0, Cp - C)))

    out = pl.pallas_call(
        functools.partial(_gap_kernel, inv_l=1.0 / float(L)),
        out_shape=jax.ShapeDtypeStruct((Np8, Cp), jnp.float32),
        grid_spec=pltpu.PrefetchScalarGridSpec(
            num_scalar_prefetch=0,
            grid=(Lp // tl,),
            in_specs=[pl.BlockSpec((Np8, tl, Cp), lambda l: (0, l, 0))],
            out_specs=pl.BlockSpec((Np8, Cp), lambda l: (0, 0)),
            scratch_shapes=[pltpu.VMEM((Np8, Cp), jnp.float32)],
        ),
        compiler_params=pltpu.CompilerParams(
            dimension_semantics=("arbitrary",),
            vmem_limit_bytes=32 * 1024 * 1024),
    )(x2)
    return out[:N, :C]


# ----------------------------------------------------------------------------
# Conv3d (im2col glue for k>1 taps + Pallas fused matmul)
# ----------------------------------------------------------------------------
def _im2col(x, ks, stride, pad):
    N, T, H, W, C = x.shape
    kt, kh, kw = ks
    st, sh, sw = stride
    pt, ph, pw = pad
    oT = (T + 2 * pt - kt) // st + 1
    oH = (H + 2 * ph - kh) // sh + 1
    oW = (W + 2 * pw - kw) // sw + 1
    xp = jnp.pad(x, ((0, 0), (pt, pt), (ph, ph), (pw, pw), (0, 0)))
    cols = []
    for dt in range(kt):
        for dh in range(kh):
            for dw in range(kw):
                cols.append(xp[:,
                               dt:dt + (oT - 1) * st + 1:st,
                               dh:dh + (oH - 1) * sh + 1:sh,
                               dw:dw + (oW - 1) * sw + 1:sw, :])
    p = jnp.stack(cols, axis=-2)               # (N,oT,oH,oW,ktaps,C)
    A = p.reshape(N * oT * oH * oW, kt * kh * kw * C)
    return A, (oT, oH, oW)


def conv_bn_act(x, conv, bn, stride, relu, residual=None):
    cout = conv['w'].shape[1]
    if bn is None:
        scale = jnp.ones((cout,), jnp.float32)
        bias = jnp.zeros((cout,), jnp.float32)
    else:
        scale, bias = bn['scale'], bn['bias']
    N = x.shape[0]
    if conv['ks'] == (1, 1, 1):
        # 1x1x1 conv: no im2col needed; strided conv == subsample then matmul.
        st, sh, sw = stride
        xs = x[:, ::st, ::sh, ::sw, :]
        _, oT, oH, oW, cin = xs.shape
        A = xs.reshape(N * oT * oH * oW, cin)
    else:
        A, (oT, oH, oW) = _im2col(x, conv['ks'], stride, conv['pad'])
    res2d = None
    if residual is not None:
        res2d = residual.reshape(N * oT * oH * oW, cout)
    out = matmul_scale_bias(A, conv['w'], scale, bias, relu, residual=res2d)
    return out.reshape(N, oT, oH, oW, cout)


# ----------------------------------------------------------------------------
# parameter construction (deterministic, PyTorch-shaped)
# ----------------------------------------------------------------------------
class KeyGen:
    def __init__(self, key):
        self.key = key
        self.i = 0

    def __call__(self):
        self.i += 1
        return jax.random.fold_in(self.key, self.i)


def make_conv(kg, cin, cout, ks, pad):
    kt, kh, kw = ks
    fan_in = cin * kt * kh * kw
    w = jax.random.normal(kg(), (kt, kh, kw, cin, cout), jnp.float32)
    w = w * np.sqrt(2.0 / fan_in)
    return {'w': w.reshape(fan_in, cout).astype(jnp.bfloat16),
            'ks': ks, 'pad': pad}


def make_bn(kg, c, eps=1e-5):
    gamma = 1.0 + 0.1 * jax.random.normal(kg(), (c,), jnp.float32)
    beta = 0.1 * jax.random.normal(kg(), (c,), jnp.float32)
    mean = 0.1 * jax.random.normal(kg(), (c,), jnp.float32)
    var = 1.0 + 0.1 * jax.random.uniform(kg(), (c,), jnp.float32)
    scale = gamma * jax.lax.rsqrt(var + eps)
    bias = beta - mean * scale
    return {'scale': scale, 'bias': bias}


def make_block(kg, inplanes, planes, stride, downsample, head_conv):
    if head_conv == 1:
        conv1 = make_conv(kg, inplanes, planes, (1, 1, 1), (0, 0, 0))
    elif head_conv == 3:
        conv1 = make_conv(kg, inplanes, planes, (3, 1, 1), (1, 0, 0))
    else:
        raise ValueError('Unsupported head_conv!')
    return {
        'conv1': conv1, 'bn1': make_bn(kg, planes),
        'conv2': make_conv(kg, planes, planes, (1, 3, 3), (0, 1, 1)),
        'bn2': make_bn(kg, planes),
        'conv3': make_conv(kg, planes, planes * 4, (1, 1, 1), (0, 0, 0)),
        'bn3': make_bn(kg, planes * 4),
        'downsample': downsample,
        'stride': stride,
    }


def make_layer(kg, inplanes, planes, blocks, stride, head_conv, slow):
    layer = []
    downsample = None
    if stride != 1 or inplanes != planes * 4:
        downsample = {'conv': make_conv(kg, inplanes, planes * 4, (1, 1, 1), (0, 0, 0)),
                      'bn': make_bn(kg, planes * 4)}
    layer.append(make_block(kg, inplanes, planes, stride, downsample, head_conv))
    inplanes = planes * 4
    for _ in range(1, blocks):
        layer.append(make_block(kg, inplanes, planes, 1, None, head_conv))
    if slow:
        inplanes = planes * 4 + planes * 4 // 8 * 2
    return layer, inplanes


def build_params(key, class_num=10, layers=(3, 4, 6, 3)):
    kg = KeyGen(key)
    p = {'fast': {}, 'slow': {}}

    f = p['fast']
    f['conv1'] = make_conv(kg, 3, 8, (5, 7, 7), (2, 3, 3))
    f['bn1'] = make_bn(kg, 8)
    fast_inplanes = 8
    f['res2'], fast_inplanes = make_layer(kg, fast_inplanes, 8, layers[0], 1, 3, slow=False)
    f['res3'], fast_inplanes = make_layer(kg, fast_inplanes, 16, layers[1], 2, 3, slow=False)
    f['res4'], fast_inplanes = make_layer(kg, fast_inplanes, 32, layers[2], 2, 3, slow=False)
    f['res5'], fast_inplanes = make_layer(kg, fast_inplanes, 64, layers[3], 2, 3, slow=False)
    f['lat_p1'] = make_conv(kg, 8, 16, (5, 1, 1), (2, 0, 0))
    f['lat_res2'] = make_conv(kg, 32, 64, (5, 1, 1), (2, 0, 0))
    f['lat_res3'] = make_conv(kg, 64, 128, (5, 1, 1), (2, 0, 0))
    f['lat_res4'] = make_conv(kg, 128, 256, (5, 1, 1), (2, 0, 0))

    s = p['slow']
    s['conv1'] = make_conv(kg, 3, 64, (1, 7, 7), (0, 3, 3))
    s['bn1'] = make_bn(kg, 64)
    slow_inplanes = 64 + 64 // 8 * 2
    s['res2'], slow_inplanes = make_layer(kg, slow_inplanes, 64, layers[0], 1, 1, slow=True)
    s['res3'], slow_inplanes = make_layer(kg, slow_inplanes, 128, layers[1], 2, 1, slow=True)
    s['res4'], slow_inplanes = make_layer(kg, slow_inplanes, 256, layers[2], 2, 1, slow=True)
    s['res5'], slow_inplanes = make_layer(kg, slow_inplanes, 512, layers[3], 2, 1, slow=True)

    p['fc'] = (jax.random.normal(kg(), (fast_inplanes + 2048, class_num), jnp.float32)
               / np.sqrt(fast_inplanes + 2048))
    return p


# ----------------------------------------------------------------------------
# forward pass
# ----------------------------------------------------------------------------
def run_block(blk, x):
    s = blk['stride']
    out = conv_bn_act(x, blk['conv1'], blk['bn1'], (1, 1, 1), relu=True)
    out = conv_bn_act(out, blk['conv2'], blk['bn2'], (1, s, s), relu=True)
    if blk['downsample'] is not None:
        residual = conv_bn_act(x, blk['downsample']['conv'],
                               blk['downsample']['bn'], (1, s, s), relu=False)
    else:
        residual = x
    # conv3 + BN + residual add + ReLU fused in a single matmul epilogue.
    return conv_bn_act(out, blk['conv3'], blk['bn3'], (1, 1, 1), relu=True,
                       residual=residual)


def run_layer(layer, x):
    for blk in layer:
        x = run_block(blk, x)
    return x


def fast_path(p, x):
    x = conv_bn_act(x, p['conv1'], p['bn1'], (1, 2, 2), relu=True)
    pool1 = maxpool_1_3_3(x)
    lateral = [conv_bn_act(pool1, p['lat_p1'], None, (8, 1, 1), relu=False)]
    res2 = run_layer(p['res2'], pool1)
    lateral.append(conv_bn_act(res2, p['lat_res2'], None, (8, 1, 1), relu=False))
    res3 = run_layer(p['res3'], res2)
    lateral.append(conv_bn_act(res3, p['lat_res3'], None, (8, 1, 1), relu=False))
    res4 = run_layer(p['res4'], res3)
    lateral.append(conv_bn_act(res4, p['lat_res4'], None, (8, 1, 1), relu=False))
    res5 = run_layer(p['res5'], res4)
    return global_avg_pool(res5), lateral


def slow_path(p, x, lateral):
    x = conv_bn_act(x, p['conv1'], p['bn1'], (1, 2, 2), relu=True)
    x = maxpool_1_3_3(x)
    x = jnp.concatenate([x, lateral[0]], axis=-1)
    x = run_layer(p['res2'], x)
    x = jnp.concatenate([x, lateral[1]], axis=-1)
    x = run_layer(p['res3'], x)
    x = jnp.concatenate([x, lateral[2]], axis=-1)
    x = run_layer(p['res4'], x)
    x = jnp.concatenate([x, lateral[3]], axis=-1)
    x = run_layer(p['res5'], x)
    return global_avg_pool(x)


def slowfast_forward(params, x_ncthw):
    # x_ncthw: (N, 3, T, H, W) like PyTorch.  Convert to channels-last NTHWC
    # and carry activations in bf16 (matmul accumulation stays f32).
    x = jnp.transpose(x_ncthw, (0, 2, 3, 4, 1)).astype(jnp.bfloat16)
    fast_feat, lateral = fast_path(params['fast'], x[:, ::2])
    slow_feat = slow_path(params['slow'], x[:, ::16], lateral)
    feat = jnp.concatenate([slow_feat, fast_feat], axis=1)
    # Dropout: identity (eval semantics).
    cn = params['fc'].shape[1]
    logits = matmul_scale_bias(feat, params['fc'],
                               jnp.ones((cn,), jnp.float32),
                               jnp.zeros((cn,), jnp.float32), relu=False,
                               out_dtype=jnp.float32)
    return logits


# ----------------------------------------------------------------------------
# main
# ----------------------------------------------------------------------------
if __name__ == "__main__":
    base_key = jax.random.PRNGKey(0)
    params = build_params(jax.random.fold_in(base_key, 1), class_num=10)

    # Small video clip: batch=2, C=3, T=16 (fast uses ::2 -> 8 frames,
    # slow uses ::16 -> 1 frame), spatial 32x32.
    x = jax.random.normal(jax.random.fold_in(base_key, 2),
                          (2, 3, 16, 32, 32), jnp.float32)

    out = slowfast_forward(params, x)
    out = jax.block_until_ready(out)

    assert out.shape == (2, 10), out.shape
    assert bool(jnp.all(jnp.isfinite(out)))
    print("KERNEL_OK")
</pallas_src>

<mosaic_0001>
module attributes {stable_mosaic.version = 11 : i64} {
  func.func @_mm_bn_act_kernel(%arg0: i32, %arg1: i32, %arg2: i32, %arg3: memref<512x768xbf16, #tpu.memory_space<vmem>>, %arg4: memref<768x128xbf16, #tpu.memory_space<vmem>>, %arg5: memref<1x128xf32, #tpu.memory_space<vmem>>, %arg6: memref<1x128xf32, #tpu.memory_space<vmem>>, %arg7: memref<512x128xbf16, #tpu.memory_space<vmem>>, %arg8: memref<512x128xf32, #tpu.memory_space<vmem>>) attributes {dimension_semantics = [#tpu.dimension_semantics<parallel>, #tpu.dimension_semantics<parallel>, #tpu.dimension_semantics<arbitrary>], iteration_bounds = array<i64: 8, 1, 1>, scalar_prefetch = 0 : i64, scratch_operands = 1 : i64, tpu.core_type = #tpu.core_type<tc>, window_params = [{transform_indices = @transform_0, window_bounds = array<i64: 512, 768>}, {transform_indices = @transform_1, window_bounds = array<i64: 768, 128>}, {transform_indices = @transform_2, window_bounds = array<i64: 1, 128>}, {transform_indices = @transform_3, window_bounds = array<i64: 1, 128>}, {transform_indices = @transform_4, window_bounds = array<i64: 512, 128>}]} {
    %c0_i32 = arith.constant 0 : i32
    %0 = arith.cmpi eq, %arg2, %c0_i32 : i32
    %1 = arith.extui %0 : i1 to i32
    %c0_i32_0 = arith.constant 0 : i32
    %2 = arith.cmpi ne, %1, %c0_i32_0 : i32
    scf.if %2 {
      %cst_10 = arith.constant 0.000000e+00 : f32
      %12 = vector.broadcast %cst_10 : f32 to vector<512x128xf32>
      %c0_11 = arith.constant 0 : index
      %c0_12 = arith.constant 0 : index
      %13 = vector.load %arg8[%c0_11, %c0_12] : memref<512x128xf32, #tpu.memory_space<vmem>>, vector<512x128xf32>
      tpu.vector_store %arg8[%c0_11, %c0_12], %12 {strides = array<i32>} : memref<512x128xf32, #tpu.memory_space<vmem>>, vector<512x128xf32>,
    } else {
    }
    %c0 = arith.constant 0 : index
    %c0_1 = arith.constant 0 : index
    %3 = vector.load %arg8[%c0, %c0_1] : memref<512x128xf32, #tpu.memory_space<vmem>>, vector<512x128xf32>
    %c0_2 = arith.constant 0 : index
    %c0_3 = arith.constant 0 : index
    %4 = vector.load %arg3[%c0_2, %c0_3] : memref<512x768xbf16, #tpu.memory_space<vmem>>, vector<512x768xbf16>
    %c0_4 = arith.constant 0 : index
    %c0_5 = arith.constant 0 : index
    %5 = vector.load %arg4[%c0_4, %c0_5] : memref<768x128xbf16, #tpu.memory_space<vmem>>, vector<768x128xbf16>
    %cst = arith.constant dense<0.000000e+00> : vector<512x128xf32>
    %6 = tpu.matmul %4, %5, %cst {dimension_numbers = #tpu.dot_dimension_numbers<[1], [0], [0], [1], [0, 0, 1, 1], [], []>} : vector<512x768xbf16>, vector<768x128xbf16>, vector<512x128xf32> -> vector<512x128xf32>
    %7 = arith.addf %3, %6 : vector<512x128xf32>
    %c0_6 = arith.constant 0 : index
    %c0_7 = arith.constant 0 : index
    %8 = vector.load %arg8[%c0_6, %c0_7] : memref<512x128xf32, #tpu.memory_space<vmem>>, vector<512x128xf32>
    tpu.vector_store %arg8[%c0_6, %c0_7], %7 {strides = array<i32>} : memref<512x128xf32, #tpu.memory_space<vmem>>, vector<512x128xf32>,
    %c0_i32_8 = arith.constant 0 : i32
    %9 = arith.cmpi eq, %arg2, %c0_i32_8 : i32
    %10 = arith.extui %9 : i1 to i32
    %c0_i32_9 = arith.constant 0 : i32
    %11 = arith.cmpi ne, %10, %c0_i32_9 : i32
    scf.if %11 {
      %c0_10 = arith.constant 0 : index
      %c0_11 = arith.constant 0 : index
      %12 = vector.load %arg8[%c0_10, %c0_11] : memref<512x128xf32, #tpu.memory_space<vmem>>, vector<512x128xf32>
      %c0_12 = arith.constant 0 : index
      %c0_13 = arith.constant 0 : index
      %13 = vector.load %arg5[%c0_12, %c0_13] : memref<1x128xf32, #tpu.memory_space<vmem>>, vector<1x128xf32>
      %14 = vector.broadcast %13 : vector<1x128xf32> to vector<512x128xf32>
      %15 = arith.mulf %12, %14 : vector<512x128xf32>
      %c0_14 = arith.constant 0 : index
      %c0_15 = arith.constant 0 : index
      %16 = vector.load %arg6[%c0_14, %c0_15] : memref<1x128xf32, #tpu.memory_space<vmem>>, vector<1x128xf32>
      %17 = vector.broadcast %16 : vector<1x128xf32> to vector<512x128xf32>
      %18 = arith.addf %15, %17 : vector<512x128xf32>
      %cst_16 = arith.constant 0.000000e+00 : f32
      %19 = vector.broadcast %cst_16 : f32 to vector<512x128xf32>
      %20 = arith.maximumf %18, %19 : vector<512x128xf32>
      %21 = arith.truncf %20 : vector<512x128xf32> to vector<512x128xbf16>
      %c0_17 = arith.constant 0 : index
      %c0_18 = arith.constant 0 : index
      %22 = vector.load %arg7[%c0_17, %c0_18] : memref<512x128xbf16, #tpu.memory_space<vmem>>, vector<512x128xbf16>
      tpu.vector_store %arg7[%c0_17, %c0_18], %21 {strides = array<i32>} : memref<512x128xbf16, #tpu.memory_space<vmem>>, vector<512x128xbf16>,
    } else {
    }
    return
  }
  func.func @transform_0(%arg0: i32, %arg1: i32, %arg2: i32) -> (i32, i32) {
    %c0_i32 = arith.constant 0 : i32
    return %arg0, %arg2 : i32, i32
  }
  func.func @transform_1(%arg0: i32, %arg1: i32, %arg2: i32) -> (i32, i32) {
    %c0_i32 = arith.constant 0 : i32
    return %arg2, %arg1 : i32, i32
  }
  func.func @transform_2(%arg0: i32, %arg1: i32, %arg2: i32) -> (i32, i32) {
    %c0_i32 = arith.constant 0 : i32
    %c0_i32_0 = arith.constant 0 : i32
    return %c0_i32, %arg1 : i32, i32
  }
  func.func @transform_3(%arg0: i32, %arg1: i32, %arg2: i32) -> (i32, i32) {
    %c0_i32 = arith.constant 0 : i32
    %c0_i32_0 = arith.constant 0 : i32
    return %c0_i32, %arg1 : i32, i32
  }
  func.func @transform_4(%arg0: i32, %arg1: i32, %arg2: i32) -> (i32, i32) {
    %c0_i32 = arith.constant 0 : i32
    return %arg0, %arg1 : i32, i32
  }
}

</mosaic_0001>

<bundles_post_ra>
// kernel: tpu_custom_call.1
= control target key start
LH: loop header
LB: loop body
LE: loop exit
PB: predicated region body
PF: predicated region fallthrough
CT: control target
= control target key end

     0   :  { %s5815_s0 = inlined_call_operand.hbm [shape: bf16[4096,768], index: 0, kind: input, shape index: {}]   ;;  %s5816_s1 = inlined_call_operand.hbm [shape: bf16[768,128], index: 1, kind: input, shape index: {}]   ;;  %s5817_s2 = inlined_call_operand.hbm [shape: f32[1,128], index: 2, kind: input, shape index: {}]   ;;  %s5818_s3 = inlined_call_operand.hbm [shape: f32[1,128], index: 3, kind: input, shape index: {}]   ;;  %s5819_s4 = inlined_call_operand.hbm [shape: bf16[4096,128], index: 4, kind: output, shape index: {}]  }
   0x1   :  { %5823 = sst [smem:[#allocation36_spill]] %s5816_s1 }
   0x2   :  { %5824 = sst [smem:[#allocation37_spill]] %s5817_s2 }
   0x3   :  { %9 = vsyncpa [#allocation4], 0 }
   0x4   :  { %11 = vsyncpa [#allocation4 + $0x1], 0 }
   0x5   :  { %12 = vsyncpa [#allocation7], 0 }
   0x6   :  { %13 = vsyncpa [#allocation10], 0 }
   0x7   :  { %14 = vsyncpa [#allocation5], 0 }
   0x8   :  { %16 = vsyncpa [#allocation5 + $0x1], 0  ;;  %s4997_s15 = smov 0   ;;  %s4999_s16 = smov 0  }
   0x9   :  { %s5001_s17 = smov 0   ;;  %s5003_s18 = smov 0  }
   0xa   :  { %s5005_s19 = smov 0   ;;  %s5007_s20 = smov 0  }
   0xb LB: > { %s3709_s21 = sadd.s32 4294967295, %s4958_s20   ;;  %s3710_s22 = sadd.s32 4294967294, %s4958_s20   ;;  %s4958_s20 = sphi %s5007_s20, %s22_s20   ;;  %s4954_s19 = sphi %s5005_s19, %s5882_s19   ;;  %s4950_s18 = sphi %s5003_s18, %s5881_s18   ;;  %s4946_s17 = sphi %s5001_s17, %s5880_s17   ;;  %s4942_s16 = sphi %s4999_s16, %s5879_s16   ;;  %s4938_s15 = sphi %s4997_s15, %s5878_s15  }
   0xc   : > { %p63_p0 = scmp.ne.s32.totalorder %s4942_s16, %s4938_s15  ;;  %p5031_p1 = scmp.eq.s32.totalorder %s3709_s21, 0 }
   0xd   : > { %p5035_p2 = scmp.eq.s32.totalorder %s3709_s21, 7  ;;  %p175_p3 = scmp.eq.s32.totalorder %s3710_s22, 7 }
   0xe   : > { %s5825_s23 = scalar_select %p5031_p1, 1, 0 }
   0xf   : > { %p5041_p4 = por %p5031_p1, %p63_p0  ;;  %p3711_p5 = scmp.ge.s32.totalorder %s4958_s20, 1 }
  0x10   : > { %p5046_p6 = por %p175_p3, %p63_p0  ;;  %p182_p7 = scmp.lt.s32.totalorder %s4958_s20, 9 }
  0x11   : > { %s5827_s25 = scalar_select %p5041_p4, 1, 0 }
  0x12   : > { %s5828_s26 = scalar_select %p5046_p6, 1, 0 }
  0x13   : > { %p5051_p8 = pnand %p3711_p5, %p182_p7  ;;  %s4960_s28 = smov [#allocation6]  }
  0x14   : > { %s198_s29 = sshll.u32 %s4960_s28, 4  ;;  %s4961_s5 = smov [#allocation8]   ;;  %s199_s29 = int_to_ptr.vmem [resolvable:$true] %s198_s29 }
  0x15   : > { %p4342_p9 = pneg %p5051_p8  ;;  %s214_s6 = sshll.u32 %s4961_s5, 4  ;;  %s215_s6 = int_to_ptr.vmem [resolvable:$true] %s214_s6 }
  0x16   : > { %s4962_s7 = smov [#allocation9]   ;;  %s4775_s9 = scalar_lea.vmem %s199_s29, 6144 }
  0x17   : > { %p5059_p10 = pnand %p4342_p9, %p5031_p1  ;;  %s227_s8 = sshll.u32 %s4962_s7, 4  ;;  %s228_s8 = int_to_ptr.vmem [resolvable:$true] %s227_s8 }
  0x18   : > { %p4776_p12 = scmp.ne.s32.totalorder %s199_s29, %s4775_s9  ;;  %p4783_p3 = scmp.lt.s32.totalorder %s199_s29, %s199_s29 }
  0x19   : > { %p4766_p11 = pneg %p5059_p10  ;;  %p4784_p5 = scmp.lt.s32.totalorder %s4775_s9, %s4775_s9 }
  0x1b   : > { %p4778_p13 = pnand %p4776_p12, %p4766_p11  ;;  %p4785_p7 = por %p4784_p5, %p4783_p3 }
  0x1d   : > { %p4779_p0 = pneg %p4778_p13 }
  0x1f   : > { %p4786_p9 = pnand %p4785_p7, %p4779_p0 }
  0x21   : > { %4789 = shalt.err (!%p4786_p9)
}
  0x22   : > { %s4963_s10 = smov 64   ;;  %s4964_s11 = smov 4  }
  0x23   : > { %s5831_s1 = sld [smem:[#allocation36_spill]]  ;;  %s4801_s14 = scalar_lea.vmem %s215_s6, 16 }
  0x24   : > { %p4802_p6 = scmp.ne.s32.totalorder %s215_s6, %s4801_s14  ;;  %s4808_s21 = scalar_lea.vmem %s215_s6, 32 }
  0x25   : > { %p4809_p1 = scmp.lt.s32.totalorder %s215_s6, %s215_s6  ;;  %p4810_p3 = scmp.lt.s32.totalorder %s4808_s21, %s4801_s14 }
  0x26   : > { %p4804_p12 = pnand %p4802_p6, %p4766_p11 }
  0x27   : > { %p4811_p0 = por %p4810_p3, %p4809_p1 }
  0x28   : > { %p4805_p13 = pneg %p4804_p12 }
  0x29   : > { %4345 = dma.hbm_to_vmem [thread:$0]  (!%p5059_p10), %s5831_s1, 6144, %s199_s29, [#allocation7], %s4963_s10, %s4963_s10, %s4964_s11  }
  0x2a   : > { %p4812_p5 = pnand %p4811_p0, %p4805_p13 }
  0x2c   : > { %4815 = shalt.err (!%p4812_p5)
}
  0x2d   : > { %s5832_s2 = sld [smem:[#allocation37_spill]]  ;;  %s4827_s29 = scalar_lea.vmem %s228_s8, 16 }
  0x2e   : > { %p4828_p7 = scmp.ne.s32.totalorder %s228_s8, %s4827_s29  ;;  %s4834_s5 = scalar_lea.vmem %s228_s8, 32 }
  0x2f   : > { %p4835_p12 = scmp.lt.s32.totalorder %s228_s8, %s228_s8  ;;  %p4836_p4 = scmp.lt.s32.totalorder %s4834_s5, %s4827_s29 }
  0x30   : > { %p4830_p6 = pnand %p4828_p7, %p4766_p11 }
  0x31   : > { %p4837_p1 = por %p4836_p4, %p4835_p12 }
  0x32   : > { %p4831_p9 = pneg %p4830_p6 }
  0x33   : > { %4348 = dma.hbm_to_vmem [thread:$0]  (!%p5059_p10), %s5832_s2, 16, %s215_s6, [#allocation7]  }
  0x34   : > { %p4838_p13 = pnand %p4837_p1, %p4831_p9 }
  0x36   : > { %4841 = shalt.err (!%p4838_p13)
}
  0x37   : > { %4351 = dma.hbm_to_vmem [thread:$0]  (!%p5059_p10), %s5818_s3, 16, %s228_s8, [#allocation10]  }
  0x38   : > { %s50_s6 = sadd.s32 1, %s4946_s17  ;;  %s41_s10 = sadd.s32 1, %s4954_s19 }
  0x39   : > { %p57_p4 = scmp.ne.s32.totalorder %s4946_s17, %s4942_s16  ;;  %p43_p11 = scmp.ge.s32.totalorder %s41_s10, 8 }
  0x3a   : > { %p58_p3 = scmp.eq.s32.totalorder %s4958_s20, 0  ;;  %p4363_p5 = scmp.lt.s32.totalorder %s4958_s20, 8 }
  0x3b   : > { %p5096_p0 = por %p5035_p2, %p57_p4  ;;  %s5884_s10 = smov (%p43_p11, %s41_s10), 0 }
  0x3c   : > { %p59_p7 = por %p58_p3, %p57_p4  ;;  %s238_s11 = sand.u32 1, %s4946_s17  }
  0x3d   : > { %s45_s12 = ssub.s32 %s4954_s19, %s5884_s10  ;;  %s4323_s8 = smul.u32 1536, %s238_s11 }
  0x3e   : > { %p48_p6 = scmp.eq.s32.totalorder %s45_s12, 0  ;;  %s4324_s13 = smul.u32 24576, %s4954_s19 }
  0x3f   : > { %p5107_p10 = pnand %p4363_p5, %p59_p7  ;;  %s242_s29 = scalar_lea.vmem [#allocation3], %s4323_s8 }
  0x40   : > { %s5112_s24 = scalar_select %p48_p6, %s4946_s17, %s50_s6  }
  0x41   : > { %s251_s28 = scalar_lea.hbm %s5815_s0, %s4324_s13  ;;  %s252_s5 = sshll.u32 %s242_s29, 4  ;;  %s253_s5 = int_to_ptr.vmem [resolvable:$true] %s252_s5 }
  0x42   : > { %s239_s7 = scalar_lea.sflag [#allocation4], %s238_s11  ;;  %p4844_p2 = pneg %p5107_p10 }
  0x43   : > { %s4855_s9 = scalar_lea.vmem %s253_s5, 24576  ;;  %s4965_s12 = smov [#allocation3]  }
  0x44   : > { %p4856_p9 = scmp.ne.s32.totalorder %s253_s5, %s4855_s9  ;;  %s4860_s1 = sshll.u32 %s4965_s12, 4  ;;  %s4861_s1 = int_to_ptr.vmem [resolvable:$false] %s4860_s1 }
  0x45   : > { %s4862_s2 = scalar_lea.vmem %s4861_s1, 49152  ;;  %p4863_p13 = scmp.lt.s32.totalorder %s253_s5, %s4861_s1 }
  0x46   : > { %p4858_p12 = pnand %p4856_p9, %p4844_p2  ;;  %p4864_p4 = scmp.lt.s32.totalorder %s4862_s2, %s4855_s9 }
  0x48   : > { %p4859_p1 = pneg %p4858_p12  ;;  %p4865_p11 = por %p4864_p4, %p4863_p13 }
  0x4a   : > { %p4866_p3 = pnand %p4865_p11, %p4859_p1 }
  0x4c   : > { %4869 = shalt.err (!%p4866_p3)
}
  0x4d   : > { %s4966_s6 = smov 384   ;;  %s4967_s8 = smov 24  }
  0x4e   : > { %4355 = dma.hbm_to_vmem [thread:$0]  (!%p5107_p10), %s251_s28, 24576, %s253_s5, %s239_s7, %s4966_s6, %s4966_s6, %s4967_s8  }
  0x4f   : > { %264 = sbr.rel (%p5051_p8) target bundleno = 758 (0x2f6), region = 36 }
  0x54   : > { %s5124_s11 = sand.u32 1, %s4942_s16   ;;  %p5835_p5 = scmp.ne.s32.totalorder %s5827_s25, 0 }
  0x55   : > { %s4325_s13 = smul.u32 1536, %s5124_s11  ;;  %s267_s1 = scalar_lea.sflag [#allocation4], %s5124_s11 }
  0x57   : > { %s5128_s2 = scalar_lea.vmem [#allocation3], %s4325_s13 }
  0x58   : > { %4921 = dma.done.wait (%p5835_p5), %s267_s1, 24576  }
  0x59   : > { %4923 = vsyncadd (%p5835_p5), %s267_s1, 4294942720  ;;  %p5836_p7 = scmp.ne.s32.totalorder %s5825_s23, 0 }
  0x5b   : > { %4925 = dma.done.wait (%p5836_p7), [#allocation7], 6160  }
  0x5c   : > { %4927 = vsyncadd (%p5836_p7), [#allocation7], 4294961136 }
  0x5d   : > { %4929 = dma.done.wait (%p5836_p7), [#allocation10], 16  }
  0x5e   : > { %4931 = vsyncadd (%p5836_p7), [#allocation10], 4294967280  ;;  %v4968_v0 = vmov 0   ;;  %v4426_v1 = vld [vmem:[#allocation6 + $0x38] sm:$0xff]   ;;  %v4427_v2 = vld [vmem:[#allocation6 + $0x30] sm:$0xff]   ;;  %s3723_s23 = sshll.u32 %s5124_s11, 8 }
  0x5f   : > { %1980 = vmatprep.subr.bf16.mxu0 %v4968_v0  ;;  %4291 = vmatprep.subr.bf16.mxu1 %v4968_v0  ;;  %v4428_v3 = vld [vmem:[#allocation6 + $0x28] sm:$0xff]   ;;  %v4429_v4 = vld [vmem:[#allocation6 + $0x20] sm:$0xff]   ;;  %v4430_v5 = vld [vmem:[#allocation6 + $0x18] sm:$0xff]   ;;  %s5522_s25 = scalar_lea.vmem [#allocation11], %s3723_s23  ;;  %s4099_s27 = sshll.u32 %s4950_s18, 12 }
  0x60   : > { %1981 = vmatpush1.bf16.msra.mxu0 %v4426_v1  ;;  %4307 = vmatpush1.bf16.msra.mxu1 %v4426_v1  ;;  %v4444_v6 = vld [vmem:[%s5128_s2 + $0x4] ss:$24 sps:$4 sm:$0xff]   ;;  %v4431_v7 = vld [vmem:[#allocation6 + $0x10] sm:$0xff]   ;;  %v4432_v9 = vld [vmem:[#allocation6 + $0x8] sm:$0xff]   ;;  %s3583_s14 = sshll.u32 %s5522_s25, 4  ;;  %s5765_s28 = scalar_lea.hbm %s5819_s4, %s4099_s27  ;;  %s5767_s14 = int_to_ptr.vmem [resolvable:$true] %s3583_s14 }
  0x61   : > { %1982 = vmatprep.subr.bf16.mxu0 %v4968_v0  ;;  %4292 = vmatprep.subr.bf16.mxu1 %v4968_v0  ;;  %v4447_v8 = vld [vmem:[%s5128_s2 + $0x304] ss:$24 sps:$4 sm:$0xff]   ;;  %v4435_v12 = vld [vmem:[#allocation6 + $0x70] sm:$0xff]   ;;  %v4436_v13 = vld [vmem:[#allocation6 + $0x68] sm:$0xff]   ;;  %s3569_s29 = scalar_lea.sflag [#allocation5], %s5124_s11  ;;  %s4870_s5 = scalar_lea.vmem %s5767_s14, 4096 }
  0x62   : > { %2012 = vmatprep.mubr.bf16.mxu0 %v4444_v6  ;;  %2140 = vmatprep.mubr.bf16.mxu1 %v4447_v8  ;;  %v4433_v10 = vld [vmem:[#allocation6] sm:$0xff]   ;;  %v4434_v11 = vld [vmem:[#allocation6 + $0x78] sm:$0xff]   ;;  %v4439_v16 = vld [vmem:[#allocation6 + $0x50] sm:$0xff]   ;;  %p4871_p8 = scmp.ne.s32.totalorder %s5767_s14, %s4870_s5  ;;  %s4969_s18 = smov [#allocation11]  }
  0x63   : > { %v4437_v14 = vld [vmem:[#allocation6 + $0x60] sm:$0xff]   ;;  %v4438_v15 = vld [vmem:[#allocation6 + $0x58] sm:$0xff]   ;;  %v4440_v17 = vld [vmem:[#allocation6 + $0x48] sm:$0xff]   ;;  %s4874_s7 = sshll.u32 %s4969_s18, 4  ;;  %s4875_s7 = int_to_ptr.vmem [resolvable:$false] %s4874_s7 }
  0x64   : > { %1983 = vmatpush1.bf16.msra.mxu0 %v4427_v2  ;;  %4308 = vmatpush1.bf16.msra.mxu1 %v4427_v2  ;;  %v4441_v18 = vld [vmem:[#allocation6 + $0x40] sm:$0xff]   ;;  %v4448_v21 = vld [vmem:[#allocation6 + $0xb8] sm:$0xff]   ;;  %v4450_v23 = vld [vmem:[%s5128_s2 + $0x34] ss:$24 sps:$4 sm:$0xff]   ;;  %p4872_p6 = pnand %p4871_p8, %p5096_p0  ;;  %s4876_s9 = scalar_lea.vmem %s4875_s7, 8192 }
  0x65   : > { %1984 = vmatprep.subr.bf16.mxu0 %v4968_v0  ;;  %4293 = vmatprep.subr.bf16.mxu1 %v4968_v0  ;;  %v4442_v19 = vld [vmem:[%s5128_s2] ss:$24 sps:$4 sm:$0xff]   ;;  %v4452_v24 = vld [vmem:[%s5128_s2 + $0x334] ss:$24 sps:$4 sm:$0xff]   ;;  %v4454_v27 = vld [vmem:[%s5128_s2 + $0x30] ss:$24 sps:$4 sm:$0xff]   ;;  %p4877_p2 = scmp.lt.s32.totalorder %s5767_s14, %s4875_s7  ;;  %p4878_p9 = scmp.lt.s32.totalorder %s4876_s9, %s4870_s5 }
  0x66   : > { %v4445_v20 = vld [vmem:[%s5128_s2 + $0x300] ss:$24 sps:$4 sm:$0xff]   ;;  %v4456_v25 = vld [vmem:[#allocation6 + $0xb0] sm:$0xff]   ;;  %v4458_v29 = vld [vmem:[%s5128_s2 + $0x64] ss:$24 sps:$4 sm:$0xff]   ;;  %p4873_p10 = pneg %p4872_p6 }
  0x67   : > { %v4449_v22 = vld [vmem:[#allocation6 + $0x138] sm:$0xff]   ;;  %v4457_v26 = vld [vmem:[#allocation6 + $0x130] sm:$0xff]   ;;  %v4464_v31 = vld [vmem:[#allocation6 + $0xa8] sm:$0xff]   ;;  %p4879_p12 = por %p4878_p9, %p4877_p2 }
  0x68   : > { %1985 = vmatpush1.bf16.msra.mxu0 %v4428_v3  ;;  %4309 = vmatpush1.bf16.msra.mxu1 %v4428_v3  ;;  %v4455_v28 = vld [vmem:[%s5128_s2 + $0x330] ss:$24 sps:$4 sm:$0xff]   ;;  %v4460_v30 = vld [vmem:[%s5128_s2 + $0x364] ss:$24 sps:$4 sm:$0xff]   ;;  %v4462_v34 = vld [vmem:[%s5128_s2 + $0x60] ss:$24 sps:$4 sm:$0xff]  }
  0x69   : > { %1986 = vmatprep.subr.bf16.mxu0 %v4968_v0  ;;  %4294 = vmatprep.subr.bf16.mxu1 %v4968_v0  ;;  %v4465_v32 = vld [vmem:[#allocation6 + $0x128] sm:$0xff]   ;;  %v4472_v33 = vld [vmem:[#allocation6 + $0xa0] sm:$0xff]   ;;  %v4480_v39 = vld [vmem:[#allocation6 + $0x98] sm:$0xff]   ;;  %p4880_p1 = pnand %p4879_p12, %p4873_p10 }
  0x6a   : > { %v4473_v35 = vld [vmem:[#allocation6 + $0x120] sm:$0xff]   ;;  %v4466_v37 = vld [vmem:[%s5128_s2 + $0x94] ss:$24 sps:$4 sm:$0xff]   ;;  %v4481_v40 = vld [vmem:[#allocation6 + $0x118] sm:$0xff]  }
  0x6b   : > { %v4463_v36 = vld [vmem:[%s5128_s2 + $0x360] ss:$24 sps:$4 sm:$0xff]   ;;  %v4468_v38 = vld [vmem:[%s5128_s2 + $0x394] ss:$24 sps:$4 sm:$0xff]   ;;  %v4470_v41 = vld [vmem:[%s5128_s2 + $0x90] ss:$24 sps:$4 sm:$0xff]  }
  0x6c   : > { %1987 = vmatpush1.bf16.msra.mxu0 %v4429_v4  ;;  %4310 = vmatpush1.bf16.msra.mxu1 %v4429_v4  ;;  %v4471_v42 = vld [vmem:[%s5128_s2 + $0x390] ss:$24 sps:$4 sm:$0xff]   ;;  %v4474_v45 = vld [vmem:[%s5128_s2 + $0xc4] ss:$24 sps:$4 sm:$0xff]   ;;  %v4478_v49 = vld [vmem:[%s5128_s2 + $0xc0] ss:$24 sps:$4 sm:$0xff]  }
  0x6d   : > { %1988 = vmatprep.subr.bf16.mxu0 %v4968_v0  ;;  %4295 = vmatprep.subr.bf16.mxu1 %v4968_v0  ;;  %v4488_v43 = vld [vmem:[#allocation6 + $0x90] sm:$0xff]   ;;  %v4476_v46 = vld [vmem:[%s5128_s2 + $0x3c4] ss:$24 sps:$4 sm:$0xff]   ;;  %v4496_v47 = vld [vmem:[#allocation6 + $0x88] sm:$0xff]  }
  0x6e   : > { %v4489_v44 = vld [vmem:[#allocation6 + $0x110] sm:$0xff]   ;;  %v4497_v48 = vld [vmem:[#allocation6 + $0x108] sm:$0xff]   ;;  %v4504_v50 = vld [vmem:[#allocation6 + $0x80] sm:$0xff]  }
  0x6f   : > { %v4505_v51 = vld [vmem:[#allocation6 + $0x100] sm:$0xff]   ;;  %v4482_v53 = vld [vmem:[%s5128_s2 + $0xf4] ss:$24 sps:$4 sm:$0xff]   ;;  %v4512_v55 = vld [vmem:[#allocation6 + $0xf8] sm:$0xff]  }
  0x70   : > { %1989 = vmatpush1.bf16.msra.mxu0 %v4430_v5  ;;  %4311 = vmatpush1.bf16.msra.mxu1 %v4430_v5  ;;  %v4479_v52 = vld [vmem:[%s5128_s2 + $0x3c0] ss:$24 sps:$4 sm:$0xff]   ;;  %v4484_v54 = vld [vmem:[%s5128_s2 + $0x3f4] ss:$24 sps:$4 sm:$0xff]   ;;  %v4486_v59 = vld [vmem:[%s5128_s2 + $0xf0] ss:$24 sps:$4 sm:$0xff]  }
  0x71   : > { %1990 = vmatprep.subr.bf16.mxu0 %v4968_v0  ;;  %4296 = vmatprep.subr.bf16.mxu1 %v4968_v0  ;;  %v4513_v56 = vld [vmem:[#allocation6 + $0x178] sm:$0xff]   ;;  %v4520_v57 = vld [vmem:[#allocation6 + $0xf0] sm:$0xff]   ;;  %v4528_v63 = vld [vmem:[#allocation6 + $0xe8] sm:$0xff]  }
  0x72   : > { %v4521_v58 = vld [vmem:[#allocation6 + $0x170] sm:$0xff]   ;;  %v4490_v61 = vld [vmem:[%s5128_s2 + $0x124] ss:$24 sps:$4 sm:$0xff]   ;;  %v4529_v1 = vld [vmem:[#allocation6 + $0x168] sm:$0xff]  }
  0x73   : > { %v4487_v60 = vld [vmem:[%s5128_s2 + $0x3f0] ss:$24 sps:$4 sm:$0xff]   ;;  %v4492_v62 = vld [vmem:[%s5128_s2 + $0x424] ss:$24 sps:$4 sm:$0xff]   ;;  %v4494_v3 = vld [vmem:[%s5128_s2 + $0x120] ss:$24 sps:$4 sm:$0xff]  }
  0x74   : > { %1991 = vmatpush1.bf16.msra.mxu0 %v4431_v7  ;;  %4312 = vmatpush1.bf16.msra.mxu1 %v4431_v7  ;;  %v4536_v2 = vld [vmem:[#allocation6 + $0xe0] sm:$0xff]   ;;  %v4498_v6 = vld [vmem:[%s5128_s2 + $0x154] ss:$24 sps:$4 sm:$0xff]   ;;  %v4544_v8 = vld [vmem:[#allocation6 + $0xd8] sm:$0xff]  }
  0x75   : > { %1992 = vmatprep.subr.bf16.mxu0 %v4968_v0  ;;  %4297 = vmatprep.subr.bf16.mxu1 %v4968_v0  ;;  %v4495_v4 = vld [vmem:[%s5128_s2 + $0x420] ss:$24 sps:$4 sm:$0xff]   ;;  %v4500_v7 = vld [vmem:[%s5128_s2 + $0x454] ss:$24 sps:$4 sm:$0xff]  }
  0x76   : > { %v4537_v5 = vld [vmem:[#allocation6 + $0x160] sm:$0xff]  }
  0x78   : > { %1993 = vmatpush1.bf16.msra.mxu0 %v4432_v9  ;;  %4313 = vmatpush1.bf16.msra.mxu1 %v4432_v9  ;;  %v4545_v9 = vld [vmem:[#allocation6 + $0x158] sm:$0xff]  }
  0x79   : > { %1994 = vmatprep.subr.bf16.mxu0 %v4968_v0  ;;  %4298 = vmatprep.subr.bf16.mxu1 %v4968_v0 }
  0x7c   : > { %1995 = vmatpush1.bf16.msra.mxu0 %v4433_v10  ;;  %4314 = vmatpush1.bf16.msra.mxu1 %v4433_v10  ;;  %v4552_v10 = vld [vmem:[#allocation6 + $0xd0] sm:$0xff]  }
  0x7d   : > { %1996 = vmatprep.subr.bf16.mxu0 %v4968_v0  ;;  %4299 = vmatprep.subr.bf16.mxu1 %v4968_v0 }
  0x80   : > { %1997 = vmatpush2.bf16.msra.mxu0 %v4434_v11  ;;  %4315 = vmatpush2.bf16.msra.mxu1 %v4434_v11  ;;  %v4553_v11 = vld [vmem:[#allocation6 + $0x150] sm:$0xff]  }
  0x81   : > { %1998 = vmatprep.subr.bf16.mxu0 %v4968_v0  ;;  %4300 = vmatprep.subr.bf16.mxu1 %v4968_v0 }
  0x84   : > { %1999 = vmatpush2.bf16.msra.mxu0 %v4435_v12  ;;  %4316 = vmatpush2.bf16.msra.mxu1 %v4435_v12  ;;  %v4502_v12 = vld [vmem:[%s5128_s2 + $0x150] ss:$24 sps:$4 sm:$0xff]  }
  0x85   : > { %2000 = vmatprep.subr.bf16.mxu0 %v4968_v0  ;;  %4301 = vmatprep.subr.bf16.mxu1 %v4968_v0 }
  0x88   : > { %2001 = vmatpush2.bf16.msra.mxu0 %v4436_v13  ;;  %4317 = vmatpush2.bf16.msra.mxu1 %v4436_v13  ;;  %v4503_v13 = vld [vmem:[%s5128_s2 + $0x450] ss:$24 sps:$4 sm:$0xff]  }
  0x89   : > { %2002 = vmatprep.subr.bf16.mxu0 %v4968_v0  ;;  %4302 = vmatprep.subr.bf16.mxu1 %v4968_v0 }
  0x8c   : > { %2003 = vmatpush2.bf16.msra.mxu0 %v4437_v14  ;;  %4318 = vmatpush2.bf16.msra.mxu1 %v4437_v14  ;;  %v4506_v14 = vld [vmem:[%s5128_s2 + $0x184] ss:$24 sps:$4 sm:$0xff]  }
  0x8d   : > { %2004 = vmatprep.subr.bf16.mxu0 %v4968_v0  ;;  %4303 = vmatprep.subr.bf16.mxu1 %v4968_v0 }
  0x90   : > { %2005 = vmatpush2.bf16.msra.mxu0 %v4438_v15  ;;  %4319 = vmatpush2.bf16.msra.mxu1 %v4438_v15  ;;  %v4508_v15 = vld [vmem:[%s5128_s2 + $0x484] ss:$24 sps:$4 sm:$0xff]  }
  0x91   : > { %2006 = vmatprep.subr.bf16.mxu0 %v4968_v0  ;;  %4304 = vmatprep.subr.bf16.mxu1 %v4968_v0 }
  0x94   : > { %2007 = vmatpush2.bf16.msra.mxu0 %v4439_v16  ;;  %4320 = vmatpush2.bf16.msra.mxu1 %v4439_v16  ;;  %v4560_v16 = vld [vmem:[#allocation6 + $0xc8] sm:$0xff]  }
  0x95   : > { %2008 = vmatprep.subr.bf16.mxu0 %v4968_v0  ;;  %4305 = vmatprep.subr.bf16.mxu1 %v4968_v0 }
  0x98   : > { %2009 = vmatpush2.bf16.msra.mxu0 %v4440_v17  ;;  %4321 = vmatpush2.bf16.msra.mxu1 %v4440_v17  ;;  %v4561_v17 = vld [vmem:[#allocation6 + $0x148] sm:$0xff]  }
  0x99   : > { %2010 = vmatprep.subr.bf16.mxu0 %v4968_v0  ;;  %4306 = vmatprep.subr.bf16.mxu1 %v4968_v0 }
  0x9c   : > { %2011 = vmatpush2.bf16.msra.mxu0 %v4441_v18  ;;  %4322 = vmatpush2.bf16.msra.mxu1 %v4441_v18  ;;  %v4568_v18 = vld [vmem:[#allocation6 + $0xc0] sm:$0xff]  }
  0x9d   : > { %2269 = vmatprep.subr.bf16.mxu1 %v4968_v0  ;;  %2558 = vmatprep.subr.bf16.mxu0 %v4968_v0 }
  0x9f   : > { %2013 = vmatmul.mubr.bf16.vlgmr.msra.gmra.mxu0 %v4442_v19  ;;  %2141 = vmatmul.mubr.bf16.vlgmr.msra.gmra.mxu1 %v4445_v20  ;;  %v4569_v19 = vld [vmem:[#allocation6 + $0x140] sm:$0xff]  }
  0xa0   : > { %2270 = vmatpush1.bf16.msra.mxu1 %v4448_v21  ;;  %2559 = vmatpush1.bf16.msra.mxu0 %v4449_v22  ;;  %v4510_v20 = vld [vmem:[%s5128_s2 + $0x180] ss:$24 sps:$4 sm:$0xff]   ;;  %v4514_v22 = vld [vmem:[%s5128_s2 + $0x1b4] ss:$24 sps:$4 sm:$0xff]  }
  0xa1   : > { %2020 = vmatprep.mubr.bf16.mxu0 %v4450_v23  ;;  %2148 = vmatprep.mubr.bf16.mxu1 %v4452_v24  ;;  %v4511_v21 = vld [vmem:[%s5128_s2 + $0x480] ss:$24 sps:$4 sm:$0xff]   ;;  %v4516_v23 = vld [vmem:[%s5128_s2 + $0x4b4] ss:$24 sps:$4 sm:$0xff]   ;;  %v4518_v24 = vld [vmem:[%s5128_s2 + $0x1b0] ss:$24 sps:$4 sm:$0xff]  }
  0xa2   : > { %2271 = vmatprep.subr.bf16.mxu1 %v4968_v0  ;;  %2560 = vmatprep.subr.bf16.mxu0 %v4968_v0 }
  0xa4   : > { %2272 = vmatpush1.bf16.msra.mxu1 %v4456_v25  ;;  %2561 = vmatpush1.bf16.msra.mxu0 %v4457_v26  ;;  %v4519_v25 = vld [vmem:[%s5128_s2 + $0x4b0] ss:$24 sps:$4 sm:$0xff]   ;;  %v4522_v26 = vld [vmem:[%s5128_s2 + $0x1e4] ss:$24 sps:$4 sm:$0xff]  }
  0xa5   : > { %2273 = vmatprep.subr.bf16.mxu1 %v4968_v0  ;;  %2562 = vmatprep.subr.bf16.mxu0 %v4968_v0 }
  0xa7   : > { %2021 = vmatmul.mubr.bf16.gmra.mxu0 %v4454_v27  ;;  %2149 = vmatmul.mubr.bf16.gmra.mxu1 %v4455_v28  ;;  %v4524_v27 = vld [vmem:[%s5128_s2 + $0x4e4] ss:$24 sps:$4 sm:$0xff]   ;;  %v4527_v28 = vld [vmem:[%s5128_s2 + $0x4e0] ss:$24 sps:$4 sm:$0xff]  }
  0xa8   : > { %2028 = vmatprep.mubr.bf16.mxu0 %v4458_v29  ;;  %2156 = vmatprep.mubr.bf16.mxu1 %v4460_v30  ;;  %v4530_v29 = vld [vmem:[%s5128_s2 + $0x214] ss:$24 sps:$4 sm:$0xff]  }
  0xa9   : > { %2274 = vmatpush1.bf16.msra.mxu1 %v4464_v31  ;;  %2563 = vmatpush1.bf16.msra.mxu0 %v4465_v32  ;;  %v4532_v30 = vld [vmem:[%s5128_s2 + $0x514] ss:$24 sps:$4 sm:$0xff]   ;;  %v4534_v31 = vld [vmem:[%s5128_s2 + $0x210] ss:$24 sps:$4 sm:$0xff]  }
  0xaa   : > { %2275 = vmatprep.subr.bf16.mxu1 %v4968_v0  ;;  %2564 = vmatprep.subr.bf16.mxu0 %v4968_v0  ;;  %v4535_v32 = vld [vmem:[%s5128_s2 + $0x510] ss:$24 sps:$4 sm:$0xff]  }
  0xad   : > { %2276 = vmatpush1.bf16.msra.mxu1 %v4472_v33  ;;  %2565 = vmatpush1.bf16.msra.mxu0 %v4473_v35  ;;  %v4538_v33 = vld [vmem:[%s5128_s2 + $0x244] ss:$24 sps:$4 sm:$0xff]   ;;  %v4542_v35 = vld [vmem:[%s5128_s2 + $0x240] ss:$24 sps:$4 sm:$0xff]  }
  0xae   : > { %2277 = vmatprep.subr.bf16.mxu1 %v4968_v0  ;;  %2566 = vmatprep.subr.bf16.mxu0 %v4968_v0 }
  0xaf   : > { %2029 = vmatmul.mubr.bf16.gmra.mxu0 %v4462_v34  ;;  %2157 = vmatmul.mubr.bf16.gmra.mxu1 %v4463_v36  ;;  %v4540_v34 = vld [vmem:[%s5128_s2 + $0x544] ss:$24 sps:$4 sm:$0xff]   ;;  %v4543_v36 = vld [vmem:[%s5128_s2 + $0x540] ss:$24 sps:$4 sm:$0xff]  }
  0xb0   : > { %2036 = vmatprep.mubr.bf16.mxu0 %v4466_v37  ;;  %2164 = vmatprep.mubr.bf16.mxu1 %v4468_v38  ;;  %v4546_v37 = vld [vmem:[%s5128_s2 + $0x274] ss:$24 sps:$4 sm:$0xff]  }
  0xb1   : > { %2278 = vmatpush1.bf16.msra.mxu1 %v4480_v39  ;;  %2567 = vmatpush1.bf16.msra.mxu0 %v4481_v40  ;;  %v4548_v38 = vld [vmem:[%s5128_s2 + $0x574] ss:$24 sps:$4 sm:$0xff]   ;;  %v4550_v39 = vld [vmem:[%s5128_s2 + $0x270] ss:$24 sps:$4 sm:$0xff]  }
  0xb2   : > { %2279 = vmatprep.subr.bf16.mxu1 %v4968_v0  ;;  %2568 = vmatprep.subr.bf16.mxu0 %v4968_v0  ;;  %v4551_v40 = vld [vmem:[%s5128_s2 + $0x570] ss:$24 sps:$4 sm:$0xff]  }
  0xb5   : > { %2280 = vmatpush1.bf16.msra.mxu1 %v4488_v43  ;;  %2569 = vmatpush1.bf16.msra.mxu0 %v4489_v44  ;;  %v4558_v43 = vld [vmem:[%s5128_s2 + $0x2a0] ss:$24 sps:$4 sm:$0xff]  }
  0xb6   : > { %2281 = vmatprep.subr.bf16.mxu1 %v4968_v0  ;;  %2570 = vmatprep.subr.bf16.mxu0 %v4968_v0  ;;  %v4559_v44 = vld [vmem:[%s5128_s2 + $0x5a0] ss:$24 sps:$4 sm:$0xff]  }
  0xb7   : > { %2037 = vmatmul.mubr.bf16.gmra.mxu0 %v4470_v41  ;;  %2165 = vmatmul.mubr.bf16.gmra.mxu1 %v4471_v42  ;;  %v4554_v41 = vld [vmem:[%s5128_s2 + $0x2a4] ss:$24 sps:$4 sm:$0xff]  }
  0xb8   : > { %2044 = vmatprep.mubr.bf16.mxu0 %v4474_v45  ;;  %2172 = vmatprep.mubr.bf16.mxu1 %v4476_v46  ;;  %v4556_v42 = vld [vmem:[%s5128_s2 + $0x5a4] ss:$24 sps:$4 sm:$0xff]   ;;  %v4562_v45 = vld [vmem:[%s5128_s2 + $0x2d4] ss:$24 sps:$4 sm:$0xff]  }
  0xb9   : > { %2282 = vmatpush1.bf16.msra.mxu1 %v4496_v47  ;;  %2571 = vmatpush1.bf16.msra.mxu0 %v4497_v48  ;;  %v4564_v46 = vld [vmem:[%s5128_s2 + $0x5d4] ss:$24 sps:$4 sm:$0xff]   ;;  %v4566_v47 = vld [vmem:[%s5128_s2 + $0x2d0] ss:$24 sps:$4 sm:$0xff]  }
  0xba   : > { %2283 = vmatprep.subr.bf16.mxu1 %v4968_v0  ;;  %2572 = vmatprep.subr.bf16.mxu0 %v4968_v0  ;;  %v4567_v48 = vld [vmem:[%s5128_s2 + $0x5d0] ss:$24 sps:$4 sm:$0xff]  }
  0xbd   : > { %2284 = vmatpush1.bf16.msra.mxu1 %v4504_v50  ;;  %2573 = vmatpush1.bf16.msra.mxu0 %v4505_v51  ;;  %v4575_v50 = vld [vmem:[%s5128_s2 + $0x14] ss:$24 sps:$4 sm:$0xff]   ;;  %v4570_v51 = vld [vmem:[%s5128_s2 + $0x8] ss:$24 sps:$4 sm:$0xff]  }
  0xbe   : > { %2285 = vmatprep.subr.bf16.mxu1 %v4968_v0  ;;  %2574 = vmatprep.subr.bf16.mxu0 %v4968_v0 }
  0xbf   : > { %2045 = vmatmul.mubr.bf16.gmra.mxu0 %v4478_v49  ;;  %2173 = vmatmul.mubr.bf16.gmra.mxu1 %v4479_v52  ;;  %v4572_v49 = vld [vmem:[%s5128_s2 + $0xc] ss:$24 sps:$4 sm:$0xff]   ;;  %v4573_v52 = vld [vmem:[%s5128_s2 + $0x10] ss:$24 sps:$4 sm:$0xff]  }
  0xc0   : > { %2052 = vmatprep.mubr.bf16.mxu0 %v4482_v53  ;;  %2180 = vmatprep.mubr.bf16.mxu1 %v4484_v54  ;;  %v4576_v53 = vld [vmem:[%s5128_s2 + $0x3c] ss:$24 sps:$4 sm:$0xff]  }
  0xc1   : > { %2286 = vmatpush2.bf16.msra.mxu1 %v4512_v55  ;;  %2575 = vmatpush2.bf16.msra.mxu0 %v4513_v56  ;;  %v4578_v54 = vld [vmem:[%s5128_s2 + $0x44] ss:$24 sps:$4 sm:$0xff]   ;;  %v4580_v55 = vld [vmem:[%s5128_s2 + $0x38] ss:$24 sps:$4 sm:$0xff]  }
  0xc2   : > { %2287 = vmatprep.subr.bf16.mxu1 %v4968_v0  ;;  %2576 = vmatprep.subr.bf16.mxu0 %v4968_v0  ;;  %v4581_v56 = vld [vmem:[%s5128_s2 + $0x40] ss:$24 sps:$4 sm:$0xff]  }
  0xc5   : > { %2288 = vmatpush2.bf16.msra.mxu1 %v4520_v57  ;;  %2577 = vmatpush2.bf16.msra.mxu0 %v4521_v58  ;;  %v4582_v57 = vld [vmem:[%s5128_s2 + $0x6c] ss:$24 sps:$4 sm:$0xff]  }
  0xc6   : > { %2289 = vmatprep.subr.bf16.mxu1 %v4968_v0  ;;  %2578 = vmatprep.subr.bf16.mxu0 %v4968_v0  ;;  %v4584_v58 = vld [vmem:[%s5128_s2 + $0x74] ss:$24 sps:$4 sm:$0xff]  }
  0xc7   : > { %2053 = vmatmul.mubr.bf16.gmra.mxu0 %v4486_v59  ;;  %2181 = vmatmul.mubr.bf16.gmra.mxu1 %v4487_v60  ;;  %v4586_v59 = vld [vmem:[%s5128_s2 + $0x68] ss:$24 sps:$4 sm:$0xff]  }
  0xc8   : > { %2060 = vmatprep.mubr.bf16.mxu0 %v4490_v61  ;;  %2188 = vmatprep.mubr.bf16.mxu1 %v4492_v62  ;;  %v4587_v60 = vld [vmem:[%s5128_s2 + $0x70] ss:$24 sps:$4 sm:$0xff]   ;;  %v4588_v61 = vld [vmem:[%s5128_s2 + $0x9c] ss:$24 sps:$4 sm:$0xff]  }
  0xc9   : > { %2290 = vmatpush2.bf16.msra.mxu1 %v4528_v63  ;;  %2579 = vmatpush2.bf16.msra.mxu0 %v4529_v1  ;;  %v4590_v62 = vld [vmem:[%s5128_s2 + $0xa4] ss:$24 sps:$4 sm:$0xff]   ;;  %v4592_v63 = vld [vmem:[%s5128_s2 + $0x98] ss:$24 sps:$4 sm:$0xff]  }
  0xca   : > { %2291 = vmatprep.subr.bf16.mxu1 %v4968_v0  ;;  %2580 = vmatprep.subr.bf16.mxu0 %v4968_v0  ;;  %v4593_v1 = vld [vmem:[%s5128_s2 + $0xa0] ss:$24 sps:$4 sm:$0xff]  }
  0xcd   : > { %2292 = vmatpush2.bf16.msra.mxu1 %v4536_v2  ;;  %2581 = vmatpush2.bf16.msra.mxu0 %v4537_v5  ;;  %v4594_v2 = vld [vmem:[%s5128_s2 + $0xcc] ss:$24 sps:$4 sm:$0xff]   ;;  %v4599_v5 = vld [vmem:[%s5128_s2 + $0xd0] ss:$24 sps:$4 sm:$0xff]  }
  0xce   : > { %2293 = vmatprep.subr.bf16.mxu1 %v4968_v0  ;;  %2582 = vmatprep.subr.bf16.mxu0 %v4968_v0 }
  0xcf   : > { %2061 = vmatmul.mubr.bf16.gmra.mxu0 %v4494_v3  ;;  %2189 = vmatmul.mubr.bf16.gmra.mxu1 %v4495_v4  ;;  %v4596_v3 = vld [vmem:[%s5128_s2 + $0xd4] ss:$24 sps:$4 sm:$0xff]   ;;  %v4598_v4 = vld [vmem:[%s5128_s2 + $0xc8] ss:$24 sps:$4 sm:$0xff]  }
  0xd0   : > { %2068 = vmatprep.mubr.bf16.mxu0 %v4498_v6  ;;  %2196 = vmatprep.mubr.bf16.mxu1 %v4500_v7  ;;  %v4600_v6 = vld [vmem:[%s5128_s2 + $0xfc] ss:$24 sps:$4 sm:$0xff]  }
  0xd1   : > { %2294 = vmatpush2.bf16.msra.mxu1 %v4544_v8  ;;  %2583 = vmatpush2.bf16.msra.mxu0 %v4545_v9  ;;  %v4602_v7 = vld [vmem:[%s5128_s2 + $0x104] ss:$24 sps:$4 sm:$0xff]   ;;  %v4604_v8 = vld [vmem:[%s5128_s2 + $0xf8] ss:$24 sps:$4 sm:$0xff]  }
  0xd2   : > { %2295 = vmatprep.subr.bf16.mxu1 %v4968_v0  ;;  %2584 = vmatprep.subr.bf16.mxu0 %v4968_v0  ;;  %v4605_v9 = vld [vmem:[%s5128_s2 + $0x100] ss:$24 sps:$4 sm:$0xff]  }
  0xd5   : > { %2296 = vmatpush2.bf16.msra.mxu1 %v4552_v10  ;;  %2585 = vmatpush2.bf16.msra.mxu0 %v4553_v11  ;;  %v4606_v10 = vld [vmem:[%s5128_s2 + $0x12c] ss:$24 sps:$4 sm:$0xff]  }
  0xd6   : > { %2297 = vmatprep.subr.bf16.mxu1 %v4968_v0  ;;  %2586 = vmatprep.subr.bf16.mxu0 %v4968_v0  ;;  %v4608_v11 = vld [vmem:[%s5128_s2 + $0x134] ss:$24 sps:$4 sm:$0xff]  }
  0xd7   : > { %2069 = vmatmul.mubr.bf16.gmra.mxu0 %v4502_v12  ;;  %2197 = vmatmul.mubr.bf16.gmra.mxu1 %v4503_v13  ;;  %v4610_v12 = vld [vmem:[%s5128_s2 + $0x128] ss:$24 sps:$4 sm:$0xff]  }
  0xd8   : > { %2076 = vmatprep.mubr.bf16.mxu0 %v4506_v14  ;;  %2204 = vmatprep.mubr.bf16.mxu1 %v4508_v15  ;;  %v4611_v13 = vld [vmem:[%s5128_s2 + $0x130] ss:$24 sps:$4 sm:$0xff]   ;;  %v4612_v14 = vld [vmem:[%s5128_s2 + $0x15c] ss:$24 sps:$4 sm:$0xff]  }
  0xd9   : > { %2298 = vmatpush2.bf16.msra.mxu1 %v4560_v16  ;;  %2587 = vmatpush2.bf16.msra.mxu0 %v4561_v17  ;;  %v4614_v15 = vld [vmem:[%s5128_s2 + $0x164] ss:$24 sps:$4 sm:$0xff]   ;;  %v4616_v16 = vld [vmem:[%s5128_s2 + $0x158] ss:$24 sps:$4 sm:$0xff]  }
  0xda   : > { %2299 = vmatprep.subr.bf16.mxu1 %v4968_v0  ;;  %2588 = vmatprep.subr.bf16.mxu0 %v4968_v0  ;;  %v4526_v0 = vld [vmem:[%s5128_s2 + $0x1e0] ss:$24 sps:$4 sm:$0xff]  }
  0xdb   : > { %v4617_v17 = vld [vmem:[%s5128_s2 + $0x160] ss:$24 sps:$4 sm:$0xff]  }
  0xdd   : > { %2300 = vmatpush2.bf16.msra.mxu1 %v4568_v18  ;;  %2589 = vmatpush2.bf16.msra.mxu0 %v4569_v19  ;;  %v4618_v18 = vld [vmem:[%s5128_s2 + $0x18c] ss:$24 sps:$4 sm:$0xff]  }
  0xde   : > { %v4620_v19 = vld [vmem:[%s5128_s2 + $0x194] ss:$24 sps:$4 sm:$0xff]  }
  0xdf   : > { %2077 = vmatmul.mubr.bf16.gmra.mxu0 %v4510_v20  ;;  %2205 = vmatmul.mubr.bf16.gmra.mxu1 %v4511_v21  ;;  %v4622_v20 = vld [vmem:[%s5128_s2 + $0x188] ss:$24 sps:$4 sm:$0xff]  }
  0xe0   : > { %2084 = vmatprep.mubr.bf16.mxu0 %v4514_v22  ;;  %2212 = vmatprep.mubr.bf16.mxu1 %v4516_v23  ;;  %v4623_v21 = vld [vmem:[%s5128_s2 + $0x190] ss:$24 sps:$4 sm:$0xff]   ;;  %v4624_v22 = vld [vmem:[%s5128_s2 + $0x1bc] ss:$24 sps:$4 sm:$0xff]  }
  0xe1   : > { %v4626_v23 = vld [vmem:[%s5128_s2 + $0x1c4] ss:$24 sps:$4 sm:$0xff]  }
  0xe7   : > { %2085 = vmatmul.mubr.bf16.gmra.mxu0 %v4518_v24  ;;  %2213 = vmatmul.mubr.bf16.gmra.mxu1 %v4519_v25 }
  0xe8   : > { %2092 = vmatprep.mubr.bf16.mxu0 %v4522_v26  ;;  %2220 = vmatprep.mubr.bf16.mxu1 %v4524_v27 }
  0xef   : > { %2093 = vmatmul.mubr.bf16.gmra.mxu0 %v4526_v0  ;;  %2221 = vmatmul.mubr.bf16.gmra.mxu1 %v4527_v28 }
  0xf0   : > { %2100 = vmatprep.mubr.bf16.mxu0 %v4530_v29  ;;  %2228 = vmatprep.mubr.bf16.mxu1 %v4532_v30  ;;  %v4628_v29 = vld [vmem:[%s5128_s2 + $0x1b8] ss:$24 sps:$4 sm:$0xff]  }
  0xf1   : > { %v4629_v30 = vld [vmem:[%s5128_s2 + $0x1c0] ss:$24 sps:$4 sm:$0xff]  }
  0xf7   : > { %2101 = vmatmul.mubr.bf16.gmra.mxu0 %v4534_v31  ;;  %2229 = vmatmul.mubr.bf16.gmra.mxu1 %v4535_v32  ;;  %v4630_v31 = vld [vmem:[%s5128_s2 + $0x1ec] ss:$24 sps:$4 sm:$0xff]  }
  0xf8   : > { %2108 = vmatprep.mubr.bf16.mxu0 %v4538_v33  ;;  %2236 = vmatprep.mubr.bf16.mxu1 %v4540_v34  ;;  %v4632_v32 = vld [vmem:[%s5128_s2 + $0x1f4] ss:$24 sps:$4 sm:$0xff]  }
  0xff   : > { %2109 = vmatmul.mubr.bf16.gmra.mxu0 %v4542_v35  ;;  %2237 = vmatmul.mubr.bf16.gmra.mxu1 %v4543_v36 }
 0x100   : > { %2116 = vmatprep.mubr.bf16.mxu0 %v4546_v37  ;;  %2244 = vmatprep.mubr.bf16.mxu1 %v4548_v38 }
 0x107   : > { %2117 = vmatmul.mubr.bf16.gmra.mxu0 %v4550_v39  ;;  %2245 = vmatmul.mubr.bf16.gmra.mxu1 %v4551_v40 }
 0x108   : > { %2124 = vmatprep.mubr.bf16.mxu0 %v4554_v41  ;;  %2252 = vmatprep.mubr.bf16.mxu1 %v4556_v42  ;;  %v4634_v41 = vld [vmem:[%s5128_s2 + $0x1e8] ss:$24 sps:$4 sm:$0xff]  }
 0x109   : > { %v4635_v42 = vld [vmem:[%s5128_s2 + $0x1f0] ss:$24 sps:$4 sm:$0xff]  }
 0x10f   : > { %2125 = vmatmul.mubr.bf16.gmra.mxu0 %v4558_v43  ;;  %2253 = vmatmul.mubr.bf16.gmra.mxu1 %v4559_v44  ;;  %v4636_v43 = vld [vmem:[%s5128_s2 + $0x21c] ss:$24 sps:$4 sm:$0xff]  }
 0x110   : > { %2132 = vmatprep.mubr.bf16.mxu0 %v4562_v45  ;;  %2260 = vmatprep.mubr.bf16.mxu1 %v4564_v46  ;;  %v4638_v44 = vld [vmem:[%s5128_s2 + $0x224] ss:$24 sps:$4 sm:$0xff]  }
 0x117   : > { %2133 = vmatmul.mubr.bf16.gmra.mxu0 %v4566_v47  ;;  %2261 = vmatmul.mubr.bf16.gmra.mxu1 %v4567_v48 }
 0x118   : > { %2301 = vmatprep.mubr.bf16.mxu1 %v4572_v49  ;;  %2590 = vmatprep.mubr.bf16.mxu0 %v4575_v50 }
 0x11f   : > { %2302 = vmatmul.mubr.bf16.vlgmr.msra.gmra.mxu1 %v4570_v51  ;;  %2591 = vmatmul.mubr.bf16.vlgmr.msra.gmra.mxu0 %v4573_v52 }
 0x120   : > { %2309 = vmatprep.mubr.bf16.mxu1 %v4576_v53  ;;  %2598 = vmatprep.mubr.bf16.mxu0 %v4578_v54  ;;  %v4640_v53 = vld [vmem:[%s5128_s2 + $0x218] ss:$24 sps:$4 sm:$0xff]  }
 0x121   : > { %v4641_v54 = vld [vmem:[%s5128_s2 + $0x220] ss:$24 sps:$4 sm:$0xff]  }
 0x127   : > { %2310 = vmatmul.mubr.bf16.gmra.mxu1 %v4580_v55  ;;  %2599 = vmatmul.mubr.bf16.gmra.mxu0 %v4581_v56  ;;  %v4644_v55 = vld [vmem:[%s5128_s2 + $0x24c] ss:$24 sps:$4 sm:$0xff]  }
 0x128   : > { %2317 = vmatprep.mubr.bf16.mxu1 %v4582_v57  ;;  %2606 = vmatprep.mubr.bf16.mxu0 %v4584_v58  ;;  %v4647_v56 = vld [vmem:[%s5128_s2 + $0x254] ss:$24 sps:$4 sm:$0xff]  }
 0x12f   : > { %2318 = vmatmul.mubr.bf16.gmra.mxu1 %v4586_v59  ;;  %2607 = vmatmul.mubr.bf16.gmra.mxu0 %v4587_v60 }
 0x130   : > { %2325 = vmatprep.mubr.bf16.mxu1 %v4588_v61  ;;  %2614 = vmatprep.mubr.bf16.mxu0 %v4590_v62 }
 0x137   : > { %2326 = vmatmul.mubr.bf16.gmra.mxu1 %v4592_v63  ;;  %2615 = vmatmul.mubr.bf16.gmra.mxu0 %v4593_v1 }
 0x138   : > { %2333 = vmatprep.mubr.bf16.mxu1 %v4594_v2  ;;  %2622 = vmatprep.mubr.bf16.mxu0 %v4596_v3  ;;  %v4642_v2 = vld [vmem:[%s5128_s2 + $0x248] ss:$24 sps:$4 sm:$0xff]  }
 0x139   : > { %v4645_v3 = vld [vmem:[%s5128_s2 + $0x250] ss:$24 sps:$4 sm:$0xff]  }
 0x13f   : > { %2334 = vmatmul.mubr.bf16.gmra.mxu1 %v4598_v4  ;;  %2623 = vmatmul.mubr.bf16.gmra.mxu0 %v4599_v5  ;;  %v4650_v4 = vld [vmem:[%s5128_s2 + $0x27c] ss:$24 sps:$4 sm:$0xff]  }
 0x140   : > { %2341 = vmatprep.mubr.bf16.mxu1 %v4600_v6  ;;  %2630 = vmatprep.mubr.bf16.mxu0 %v4602_v7  ;;  %v4653_v5 = vld [vmem:[%s5128_s2 + $0x284] ss:$24 sps:$4 sm:$0xff]  }
 0x147   : > { %2342 = vmatmul.mubr.bf16.gmra.mxu1 %v4604_v8  ;;  %2631 = vmatmul.mubr.bf16.gmra.mxu0 %v4605_v9 }
 0x148   : > { %2349 = vmatprep.mubr.bf16.mxu1 %v4606_v10  ;;  %2638 = vmatprep.mubr.bf16.mxu0 %v4608_v11 }
 0x14f   : > { %2350 = vmatmul.mubr.bf16.gmra.mxu1 %v4610_v12  ;;  %2639 = vmatmul.mubr.bf16.gmra.mxu0 %v4611_v13 }
 0x150   : > { %2357 = vmatprep.mubr.bf16.mxu1 %v4612_v14  ;;  %2646 = vmatprep.mubr.bf16.mxu0 %v4614_v15  ;;  %v4648_v14 = vld [vmem:[%s5128_s2 + $0x278] ss:$24 sps:$4 sm:$0xff]  }
 0x151   : > { %v4651_v15 = vld [vmem:[%s5128_s2 + $0x280] ss:$24 sps:$4 sm:$0xff]  }
 0x157   : > { %2358 = vmatmul.mubr.bf16.gmra.mxu1 %v4616_v16  ;;  %2647 = vmatmul.mubr.bf16.gmra.mxu0 %v4617_v17  ;;  %v4656_v16 = vld [vmem:[%s5128_s2 + $0x2ac] ss:$24 sps:$4 sm:$0xff]  }
 0x158   : > { %2365 = vmatprep.mubr.bf16.mxu1 %v4618_v18  ;;  %2654 = vmatprep.mubr.bf16.mxu0 %v4620_v19  ;;  %v4659_v17 = vld [vmem:[%s5128_s2 + $0x2b4] ss:$24 sps:$4 sm:$0xff]  }
 0x15f   : > { %v5308_v24 = vpop.f32.mrf.mxu0  ;;  %v5310_v25 = vpop.f32.mrf.mxu1  ;;  %2366 = vmatmul.mubr.bf16.gmra.mxu1 %v4622_v20  ;;  %2655 = vmatmul.mubr.bf16.gmra.mxu0 %v4623_v21 }
 0x160   : > { %2373 = vmatprep.mubr.bf16.mxu1 %v4624_v22  ;;  %2662 = vmatprep.mubr.bf16.mxu0 %v4626_v23 }
 0x161   : > { %v2016_v26 = vpop.f32.mrf.mxu0  ;;  %v2144_v27 = vpop.f32.mrf.mxu1 }
 0x163   : > { %v5312_v0 = vpop.f32.mrf.mxu0  ;;  %v5314_v28 = vpop.f32.mrf.mxu1 }
 0x165   : > { %v2019_v33 = vpop.f32.mrf.mxu0  ;;  %v2147_v34 = vpop.f32.mrf.mxu1 }
 0x167   : > { %v5320_v35 = vpop.f32.mrf.mxu0  ;;  %v5322_v36 = vpop.f32.mrf.mxu1  ;;  %2374 = vmatmul.mubr.bf16.gmra.mxu1 %v4628_v29  ;;  %2663 = vmatmul.mubr.bf16.gmra.mxu0 %v4629_v30  ;;  %v4654_v29 = vld [vmem:[%s5128_s2 + $0x2a8] ss:$24 sps:$4 sm:$0xff]  }
 0x168   : > { %2381 = vmatprep.mubr.bf16.mxu1 %v4630_v31  ;;  %2670 = vmatprep.mubr.bf16.mxu0 %v4632_v32  ;;  %v4657_v30 = vld [vmem:[%s5128_s2 + $0x2b0] ss:$24 sps:$4 sm:$0xff]   ;;  %v4662_v31 = vld [vmem:[%s5128_s2 + $0x2dc] ss:$24 sps:$4 sm:$0xff]  }
 0x169   : > { %v2024_v37 = vpop.f32.mrf.mxu0  ;;  %v2152_v38 = vpop.f32.mrf.mxu1  ;;  %v4665_v32 = vld [vmem:[%s5128_s2 + $0x2e4] ss:$24 sps:$4 sm:$0xff]  }
 0x16b   : > { %v5324_v39 = vpop.f32.mrf.mxu0  ;;  %v5326_v40 = vpop.f32.mrf.mxu1 }
 0x16d   : > { %v2027_v45 = vpop.f32.mrf.mxu0  ;;  %v2155_v46 = vpop.f32.mrf.mxu1 }
 0x16e   : > { %v4660_v45 = vld [vmem:[%s5128_s2 + $0x2d8] ss:$24 sps:$4 sm:$0xff]  }
 0x16f   : > { %v5332_v47 = vpop.f32.mrf.mxu0  ;;  %v5334_v48 = vpop.f32.mrf.mxu1  ;;  %2382 = vmatmul.mubr.bf16.gmra.mxu1 %v4634_v41  ;;  %2671 = vmatmul.mubr.bf16.gmra.mxu0 %v4635_v42  ;;  %v4663_v46 = vld [vmem:[%s5128_s2 + $0x2e0] ss:$24 sps:$4 sm:$0xff]  }
 0x170   : > { %2389 = vmatprep.mubr.bf16.mxu1 %v4636_v43  ;;  %2678 = vmatprep.mubr.bf16.mxu0 %v4638_v44 }
 0x171   : > { %v2032_v49 = vpop.f32.mrf.mxu0  ;;  %v2160_v50 = vpop.f32.mrf.mxu1 }
 0x172   : > { %v4668_v49 = vld [vmem:[%s5128_s2 + $0x30c] ss:$24 sps:$4 sm:$0xff]  }
 0x173   : > { %v5336_v51 = vpop.f32.mrf.mxu0  ;;  %v5338_v52 = vpop.f32.mrf.mxu1  ;;  %v4671_v50 = vld [vmem:[%s5128_s2 + $0x314] ss:$24 sps:$4 sm:$0xff]  }
 0x175   : > { %v2035_v57 = vpop.f32.mrf.mxu0  ;;  %v2163_v58 = vpop.f32.mrf.mxu1 }
 0x177   : > { %v5344_v59 = vpop.f32.mrf.mxu0  ;;  %v5346_v60 = vpop.f32.mrf.mxu1  ;;  %2390 = vmatmul.mubr.bf16.gmra.mxu1 %v4640_v53  ;;  %2679 = vmatmul.mubr.bf16.gmra.mxu0 %v4641_v54 }
 0x178   : > { %2397 = vmatprep.mubr.bf16.mxu1 %v4644_v55  ;;  %2686 = vmatprep.mubr.bf16.mxu0 %v4647_v56 }
 0x179   : > { %v2040_v61 = vpop.f32.mrf.mxu0  ;;  %v2168_v62 = vpop.f32.mrf.mxu1 }
 0x17b   : > { %v5348_v63 = vpop.f32.mrf.mxu0  ;;  %v5350_v1 = vpop.f32.mrf.mxu1 }
 0x17d   : > { %v2043_v6 = vpop.f32.mrf.mxu0  ;;  %v2171_v7 = vpop.f32.mrf.mxu1 }
 0x17f   : > { %v5356_v8 = vpop.f32.mrf.mxu0  ;;  %v5358_v9 = vpop.f32.mrf.mxu1  ;;  %2398 = vmatmul.mubr.bf16.gmra.mxu1 %v4642_v2  ;;  %2687 = vmatmul.mubr.bf16.gmra.mxu0 %v4645_v3  ;;  %v4666_v2 = vld [vmem:[%s5128_s2 + $0x308] ss:$24 sps:$4 sm:$0xff]  }
 0x180   : > { %2405 = vmatprep.mubr.bf16.mxu1 %v4650_v4  ;;  %2694 = vmatprep.mubr.bf16.mxu0 %v4653_v5  ;;  %v4669_v3 = vld [vmem:[%s5128_s2 + $0x310] ss:$24 sps:$4 sm:$0xff]   ;;  %v4674_v4 = vld [vmem:[%s5128_s2 + $0x33c] ss:$24 sps:$4 sm:$0xff]  }
 0x181   : > { %v2048_v10 = vpop.f32.mrf.mxu0  ;;  %v2176_v11 = vpop.f32.mrf.mxu1  ;;  %v4677_v5 = vld [vmem:[%s5128_s2 + $0x344] ss:$24 sps:$4 sm:$0xff]  }
 0x183   : > { %v5360_v12 = vpop.f32.mrf.mxu0  ;;  %v5362_v13 = vpop.f32.mrf.mxu1 }
 0x185   : > { %v2051_v18 = vpop.f32.mrf.mxu0  ;;  %v2179_v19 = vpop.f32.mrf.mxu1 }
 0x186   : > { %v4672_v18 = vld [vmem:[%s5128_s2 + $0x338] ss:$24 sps:$4 sm:$0xff]  }
 0x187   : > { %v5368_v20 = vpop.f32.mrf.mxu0  ;;  %v5370_v21 = vpop.f32.mrf.mxu1  ;;  %2406 = vmatmul.mubr.bf16.gmra.mxu1 %v4648_v14  ;;  %2695 = vmatmul.mubr.bf16.gmra.mxu0 %v4651_v15  ;;  %v4675_v19 = vld [vmem:[%s5128_s2 + $0x340] ss:$24 sps:$4 sm:$0xff]  }
 0x188   : > { %2413 = vmatprep.mubr.bf16.mxu1 %v4656_v16  ;;  %2702 = vmatprep.mubr.bf16.mxu0 %v4659_v17 }
 0x189   : > { %v2056_v22 = vpop.f32.mrf.mxu0  ;;  %v2184_v23 = vpop.f32.mrf.mxu1 }
 0x18a   : > { %v4680_v22 = vld [vmem:[%s5128_s2 + $0x36c] ss:$24 sps:$4 sm:$0xff]  }
 0x18b   : > { %v5372_v26 = vpop.f32.mrf.mxu0  ;;  %v5374_v27 = vpop.f32.mrf.mxu1  ;;  %v4683_v23 = vld [vmem:[%s5128_s2 + $0x374] ss:$24 sps:$4 sm:$0xff]  }
 0x18d   : > { %v2059_v33 = vpop.f32.mrf.mxu0  ;;  %v2187_v34 = vpop.f32.mrf.mxu1 }
 0x18f   : > { %v5380_v37 = vpop.f32.mrf.mxu0  ;;  %v5382_v38 = vpop.f32.mrf.mxu1  ;;  %2414 = vmatmul.mubr.bf16.gmra.mxu1 %v4654_v29  ;;  %2703 = vmatmul.mubr.bf16.gmra.mxu0 %v4657_v30 }
 0x190   : > { %5837 = vst [vmem:[#allocation16_spill] sm:$0xff] %v5382_v38  ;;  %2421 = vmatprep.mubr.bf16.mxu1 %v4662_v31  ;;  %2710 = vmatprep.mubr.bf16.mxu0 %v4665_v32 }
 0x191   : > { %v2064_v41 = vpop.f32.mrf.mxu0  ;;  %v2192_v42 = vpop.f32.mrf.mxu1 }
 0x193   : > { %v5384_v43 = vpop.f32.mrf.mxu0  ;;  %v5386_v44 = vpop.f32.mrf.mxu1 }
 0x194   : > { %5838 = vst [vmem:[#allocation17_spill] sm:$0xff] %v5386_v44 }
 0x195   : > { %v2067_v53 = vpop.f32.mrf.mxu0  ;;  %v2195_v54 = vpop.f32.mrf.mxu1 }
 0x197   : > { %v5392_v55 = vpop.f32.mrf.mxu0  ;;  %v5394_v56 = vpop.f32.mrf.mxu1  ;;  %2422 = vmatmul.mubr.bf16.gmra.mxu1 %v4660_v45  ;;  %2711 = vmatmul.mubr.bf16.gmra.mxu0 %v4663_v46  ;;  %v4678_v45 = vld [vmem:[%s5128_s2 + $0x368] ss:$24 sps:$4 sm:$0xff]  }
 0x198   : > { %5839 = vst [vmem:[#allocation18_spill] sm:$0xff] %v5394_v56  ;;  %2429 = vmatprep.mubr.bf16.mxu1 %v4668_v49  ;;  %2718 = vmatprep.mubr.bf16.mxu0 %v4671_v50  ;;  %v4681_v46 = vld [vmem:[%s5128_s2 + $0x370] ss:$24 sps:$4 sm:$0xff]   ;;  %v4686_v49 = vld [vmem:[%s5128_s2 + $0x39c] ss:$24 sps:$4 sm:$0xff]  }
 0x199   : > { %v2072_v57 = vpop.f32.mrf.mxu0  ;;  %v2200_v58 = vpop.f32.mrf.mxu1  ;;  %v4689_v50 = vld [vmem:[%s5128_s2 + $0x3a4] ss:$24 sps:$4 sm:$0xff]   ;;  %v4731_v56 = vld [vmem:[%s5128_s2 + $0x4f4] ss:$24 sps:$4 sm:$0xff]  }
 0x19b   : > { %v5396_v61 = vpop.f32.mrf.mxu0  ;;  %v5398_v62 = vpop.f32.mrf.mxu1 }
 0x19c   : > { %5840 = vst [vmem:[#allocation19_spill] sm:$0xff] %v5398_v62  ;;  %v4728_v62 = vld [vmem:[%s5128_s2 + $0x4ec] ss:$24 sps:$4 sm:$0xff]  }
 0x19d   : > { %v2075_v6 = vpop.f32.mrf.mxu0  ;;  %v2203_v7 = vpop.f32.mrf.mxu1 }
 0x19e   : > { %v4684_v6 = vld [vmem:[%s5128_s2 + $0x398] ss:$24 sps:$4 sm:$0xff]  }
 0x19f   : > { %v5404_v10 = vpop.f32.mrf.mxu0  ;;  %v5406_v11 = vpop.f32.mrf.mxu1  ;;  %2430 = vmatmul.mubr.bf16.gmra.mxu1 %v4666_v2  ;;  %2719 = vmatmul.mubr.bf16.gmra.mxu0 %v4669_v3  ;;  %v4687_v7 = vld [vmem:[%s5128_s2 + $0x3a0] ss:$24 sps:$4 sm:$0xff]  }
 0x1a0   : > { %5841 = vst [vmem:[#allocation20_spill] sm:$0xff] %v5406_v11  ;;  %2437 = vmatprep.mubr.bf16.mxu1 %v4674_v4  ;;  %2726 = vmatprep.mubr.bf16.mxu0 %v4677_v5  ;;  %v4723_v11 = vld [vmem:[%s5128_s2 + $0x4c0] ss:$24 sps:$4 sm:$0xff]  }
 0x1a1   : > { %v2080_v14 = vpop.f32.mrf.mxu0  ;;  %v2208_v15 = vpop.f32.mrf.mxu1 }
 0x1a2   : > { %v4692_v14 = vld [vmem:[%s5128_s2 + $0x3cc] ss:$24 sps:$4 sm:$0xff]  }
 0x1a3   : > { %v5408_v16 = vpop.f32.mrf.mxu0  ;;  %v5410_v17 = vpop.f32.mrf.mxu1  ;;  %v4695_v15 = vld [vmem:[%s5128_s2 + $0x3d4] ss:$24 sps:$4 sm:$0xff]  }
 0x1a4   : > { %5842 = vst [vmem:[#allocation21_spill] sm:$0xff] %v5410_v17 }
 0x1a5   : > { %v2083_v29 = vpop.f32.mrf.mxu0  ;;  %v2211_v30 = vpop.f32.mrf.mxu1 }
 0x1a7   : > { %v5416_v31 = vpop.f32.mrf.mxu0  ;;  %v5418_v32 = vpop.f32.mrf.mxu1  ;;  %2438 = vmatmul.mubr.bf16.gmra.mxu1 %v4672_v18  ;;  %2727 = vmatmul.mubr.bf16.gmra.mxu0 %v4675_v19 }
 0x1a8   : > { %5843 = vst [vmem:[#allocation22_spill] sm:$0xff] %v5418_v32  ;;  %2445 = vmatprep.mubr.bf16.mxu1 %v4680_v22  ;;  %2734 = vmatprep.mubr.bf16.mxu0 %v4683_v23  ;;  %v4725_v32 = vld [vmem:[%s5128_s2 + $0x4c4] ss:$24 sps:$4 sm:$0xff]  }
 0x1a9   : > { %v2088_v33 = vpop.f32.mrf.mxu0  ;;  %v2216_v34 = vpop.f32.mrf.mxu1 }
 0x1ab   : > { %v5420_v41 = vpop.f32.mrf.mxu0  ;;  %v5422_v42 = vpop.f32.mrf.mxu1 }
 0x1ac   : > { %5844 = vst [vmem:[#allocation23_spill] sm:$0xff] %v5422_v42  ;;  %v4722_v42 = vld [vmem:[%s5128_s2 + $0x4bc] ss:$24 sps:$4 sm:$0xff]  }
 0x1ad   : > { %v2091_v53 = vpop.f32.mrf.mxu0  ;;  %v2219_v54 = vpop.f32.mrf.mxu1 }
 0x1af   : > { %v5428_v57 = vpop.f32.mrf.mxu0  ;;  %v5430_v58 = vpop.f32.mrf.mxu1  ;;  %2446 = vmatmul.mubr.bf16.gmra.mxu1 %v4678_v45  ;;  %2735 = vmatmul.mubr.bf16.gmra.mxu0 %v4681_v46  ;;  %v4690_v45 = vld [vmem:[%s5128_s2 + $0x3c8] ss:$24 sps:$4 sm:$0xff]  }
 0x1b0   : > { %5845 = vst [vmem:[#allocation24_spill] sm:$0xff] %v5430_v58  ;;  %2453 = vmatprep.mubr.bf16.mxu1 %v4686_v49  ;;  %2742 = vmatprep.mubr.bf16.mxu0 %v4689_v50  ;;  %v4693_v46 = vld [vmem:[%s5128_s2 + $0x3d0] ss:$24 sps:$4 sm:$0xff]   ;;  %v4698_v49 = vld [vmem:[%s5128_s2 + $0x3fc] ss:$24 sps:$4 sm:$0xff]  }
 0x1b1   : > { %v2096_v2 = vpop.f32.mrf.mxu0  ;;  %v2224_v3 = vpop.f32.mrf.mxu1  ;;  %v4701_v50 = vld [vmem:[%s5128_s2 + $0x404] ss:$24 sps:$4 sm:$0xff]   ;;  %v4717_v58 = vld [vmem:[%s5128_s2 + $0x490] ss:$24 sps:$4 sm:$0xff]  }
 0x1b3   : > { %v5432_v4 = vpop.f32.mrf.mxu0  ;;  %v5434_v5 = vpop.f32.mrf.mxu1 }
 0x1b4   : > { %5846 = vst [vmem:[#allocation25_spill] sm:$0xff] %v5434_v5 }
 0x1b5   : > { %v2099_v18 = vpop.f32.mrf.mxu0  ;;  %v2227_v19 = vpop.f32.mrf.mxu1 }
 0x1b6   : > { %v4696_v18 = vld [vmem:[%s5128_s2 + $0x3f8] ss:$24 sps:$4 sm:$0xff]  }
 0x1b7   : > { %v5440_v22 = vpop.f32.mrf.mxu0  ;;  %v5442_v23 = vpop.f32.mrf.mxu1  ;;  %2454 = vmatmul.mubr.bf16.gmra.mxu1 %v4684_v6  ;;  %2743 = vmatmul.mubr.bf16.gmra.mxu0 %v4687_v7  ;;  %v4699_v19 = vld [vmem:[%s5128_s2 + $0x400] ss:$24 sps:$4 sm:$0xff]  }
 0x1b8   : > { %5847 = vst [vmem:[#allocation26_spill] sm:$0xff] %v5442_v23  ;;  %2461 = vmatprep.mubr.bf16.mxu1 %v4692_v14  ;;  %2750 = vmatprep.mubr.bf16.mxu0 %v4695_v15  ;;  %v4711_v23 = vld [vmem:[%s5128_s2 + $0x460] ss:$24 sps:$4 sm:$0xff]  }
 0x1b9   : > { %v2104_v29 = vpop.f32.mrf.mxu0  ;;  %v2232_v30 = vpop.f32.mrf.mxu1 }
 0x1ba   : > { %v4704_v29 = vld [vmem:[%s5128_s2 + $0x42c] ss:$24 sps:$4 sm:$0xff]  }
 0x1bb   : > { %v5444_v33 = vpop.f32.mrf.mxu0  ;;  %v5446_v34 = vpop.f32.mrf.mxu1  ;;  %v4707_v30 = vld [vmem:[%s5128_s2 + $0x434] ss:$24 sps:$4 sm:$0xff]  }
 0x1bc   : > { %5848 = vst [vmem:[#allocation27_spill] sm:$0xff] %v5446_v34 }
 0x1bd   : > { %v2107_v53 = vpop.f32.mrf.mxu0  ;;  %v2235_v54 = vpop.f32.mrf.mxu1 }
 0x1bf   : > { %v5452_v2 = vpop.f32.mrf.mxu0  ;;  %v5454_v3 = vpop.f32.mrf.mxu1  ;;  %2462 = vmatmul.mubr.bf16.gmra.mxu1 %v4690_v45  ;;  %2751 = vmatmul.mubr.bf16.gmra.mxu0 %v4693_v46 }
 0x1c0   : > { %5849 = vst [vmem:[#allocation28_spill] sm:$0xff] %v5454_v3  ;;  %2469 = vmatprep.mubr.bf16.mxu1 %v4698_v49  ;;  %2758 = vmatprep.mubr.bf16.mxu0 %v4701_v50  ;;  %v4705_v3 = vld [vmem:[%s5128_s2 + $0x430] ss:$24 sps:$4 sm:$0xff]  }
 0x1c1   : > { %v2112_v6 = vpop.f32.mrf.mxu0  ;;  %v2240_v7 = vpop.f32.mrf.mxu1 }
 0x1c3   : > { %v5456_v14 = vpop.f32.mrf.mxu0  ;;  %v5458_v15 = vpop.f32.mrf.mxu1 }
 0x1c4   : > { %5850 = vst [vmem:[#allocation29_spill] sm:$0xff] %v5458_v15  ;;  %v4702_v15 = vld [vmem:[%s5128_s2 + $0x428] ss:$24 sps:$4 sm:$0xff]  }
 0x1c5   : > { %v2115_v53 = vpop.f32.mrf.mxu0  ;;  %v2243_v54 = vpop.f32.mrf.mxu1 }
 0x1c6   : > { %v4710_v53 = vld [vmem:[%s5128_s2 + $0x45c] ss:$24 sps:$4 sm:$0xff]  }
 0x1c7   : > { %v5464_v45 = vpop.f32.mrf.mxu0  ;;  %v5466_v46 = vpop.f32.mrf.mxu1  ;;  %2470 = vmatmul.mubr.bf16.gmra.mxu1 %v4696_v18  ;;  %2759 = vmatmul.mubr.bf16.gmra.mxu0 %v4699_v19  ;;  %v4713_v54 = vld [vmem:[%s5128_s2 + $0x464] ss:$24 sps:$4 sm:$0xff]  }
 0x1c8   : > { %5851 = vst [vmem:[#allocation30_spill] sm:$0xff] %v5466_v46  ;;  %2477 = vmatprep.mubr.bf16.mxu1 %v4704_v29  ;;  %2766 = vmatprep.mubr.bf16.mxu0 %v4707_v30 }
 0x1c9   : > { %v2120_v49 = vpop.f32.mrf.mxu0  ;;  %v2248_v50 = vpop.f32.mrf.mxu1 }
 0x1cb   : > { %v5468_v6 = vpop.f32.mrf.mxu0  ;;  %v5470_v7 = vpop.f32.mrf.mxu1 }
 0x1cc   : > { %5852 = vst [vmem:[#allocation31_spill] sm:$0xff] %v5470_v7  ;;  %v4708_v7 = vld [vmem:[%s5128_s2 + $0x458] ss:$24 sps:$4 sm:$0xff]  }
 0x1cd   : > { %v2123_v34 = vpop.f32.mrf.mxu0  ;;  %v2251_v46 = vpop.f32.mrf.mxu1 }
 0x1ce   : > { %v4716_v34 = vld [vmem:[%s5128_s2 + $0x48c] ss:$24 sps:$4 sm:$0xff]  }
 0x1cf   : > { %v5476_v18 = vpop.f32.mrf.mxu0  ;;  %v5478_v19 = vpop.f32.mrf.mxu1  ;;  %2478 = vmatmul.mubr.bf16.gmra.mxu1 %v4702_v15  ;;  %2767 = vmatmul.mubr.bf16.gmra.mxu0 %v4705_v3  ;;  %v4719_v46 = vld [vmem:[%s5128_s2 + $0x494] ss:$24 sps:$4 sm:$0xff]  }
 0x1d0   : > { %5853 = vst [vmem:[#allocation32_spill] sm:$0xff] %v5478_v19  ;;  %2485 = vmatprep.mubr.bf16.mxu1 %v4710_v53  ;;  %2774 = vmatprep.mubr.bf16.mxu0 %v4713_v54 }
 0x1d1   : > { %v2128_v29 = vpop.f32.mrf.mxu0  ;;  %v2256_v30 = vpop.f32.mrf.mxu1 }
 0x1d3   : > { %v5480_v49 = vpop.f32.mrf.mxu0  ;;  %v5482_v50 = vpop.f32.mrf.mxu1 }
 0x1d4   : > { %5854 = vst [vmem:[#allocation33_spill] sm:$0xff] %v5482_v50  ;;  %v4714_v50 = vld [vmem:[%s5128_s2 + $0x488] ss:$24 sps:$4 sm:$0xff]  }
 0x1d5   : > { %v2131_v5 = vpop.f32.mrf.mxu0  ;;  %v2259_v19 = vpop.f32.mrf.mxu1 }
 0x1d7   : > { %v5488_v15 = vpop.f32.mrf.mxu0  ;;  %v5490_v3 = vpop.f32.mrf.mxu1  ;;  %2486 = vmatmul.mubr.bf16.gmra.mxu1 %v4708_v7  ;;  %2775 = vmatmul.mubr.bf16.gmra.mxu0 %v4711_v23 }
 0x1d8   : > { %5855 = vst [vmem:[#allocation34_spill] sm:$0xff] %v5490_v3  ;;  %2493 = vmatprep.mubr.bf16.mxu1 %v4716_v34  ;;  %2782 = vmatprep.mubr.bf16.mxu0 %v4719_v46  ;;  %v5501_v34 = vld [vmem:[#allocation8] ss:$0 sm:$0xff] }
 0x1d9   : > { %v2136_v53 = vpop.f32.mrf.mxu0  ;;  %v2264_v54 = vpop.f32.mrf.mxu1 }
 0x1db   : > { %v5492_v29 = vpop.f32.mrf.mxu0  ;;  %v5494_v30 = vpop.f32.mrf.mxu1 }
 0x1dc   : > { %5856 = vst [vmem:[#allocation35_spill] sm:$0xff] %v5494_v30 }
 0x1dd   : > { %v2139_v5 = vpop.f32.mrf.mxu0  ;;  %v2267_v19 = vpop.f32.mrf.mxu1 }
 0x1de   : > { %v4720_v5 = vld [vmem:[%s5128_s2 + $0x4b8] ss:$24 sps:$4 sm:$0xff]  }
 0x1df   : > { %v2303_v17 = vpop.f32.mrf.mxu1  ;;  %2494 = vmatmul.mubr.bf16.gmra.mxu1 %v4714_v50  ;;  %v2592_v23 = vpop.f32.mrf.mxu0  ;;  %2783 = vmatmul.mubr.bf16.gmra.mxu0 %v4717_v58  ;;  %v5509_v58 = vld [vmem:[#allocation9] ss:$0 sm:$0xff] }
 0x1e0   : > { %v2304_v7 = vadd.f32 %v2303_v17, %v5308_v24  ;;  %2501 = vmatprep.mubr.bf16.mxu1 %v4722_v42  ;;  %2790 = vmatprep.mubr.bf16.mxu0 %v4725_v32 }
 0x1e1   : > { %v2305_v46 = vpop.f32.mrf.mxu1  ;;  %v2594_v53 = vpop.f32.mrf.mxu0 }
 0x1e2   : > { %v2593_v54 = vadd.f32 %v2592_v23, %v2304_v7 }
 0x1e3   : > { %v2306_v30 = vpop.f32.mrf.mxu1  ;;  %v2595_v3 = vpop.f32.mrf.mxu0 }
 0x1e4   : > { %v3049_v19 = vmul.f32 %v5501_v34, %v2593_v54  ;;  %v2307_v50 = vadd.f32 %v2306_v30, %v5312_v0 }
 0x1e5   : > { %v2308_v24 = vpop.f32.mrf.mxu1  ;;  %v2597_v17 = vpop.f32.mrf.mxu0 }
 0x1e6   : > { %v2596_v32 = vadd.f32 %v2595_v3, %v2307_v50  ;;  %v3120_v7 = vadd.f32 %v5509_v58, %v3049_v19  ;;  %v4726_v24 = vld [vmem:[%s5128_s2 + $0x4e8] ss:$24 sps:$4 sm:$0xff]  }
 0x1e7   : > { %v2311_v42 = vpop.f32.mrf.mxu1  ;;  %2502 = vmatmul.mubr.bf16.gmra.mxu1 %v4720_v5  ;;  %v2600_v23 = vpop.f32.mrf.mxu0  ;;  %2791 = vmatmul.mubr.bf16.gmra.mxu0 %v4723_v11  ;;  %v4729_v11 = vld [vmem:[%s5128_s2 + $0x4f0] ss:$24 sps:$4 sm:$0xff]  }
 0x1e8   : > { %v3050_v46 = vmul.f32 %v5501_v34, %v2596_v32  ;;  %v2312_v0 = vadd.f32 %v2311_v42, %v5320_v35  ;;  %2509 = vmatprep.mubr.bf16.mxu1 %v4728_v62  ;;  %2798 = vmatprep.mubr.bf16.mxu0 %v4731_v56  ;;  %v3184_v17 = vmax.f32 %v3120_v7, 0.0  ;;  %v4734_v42 = vld [vmem:[%s5128_s2 + $0x51c] ss:$24 sps:$4 sm:$0xff]  }
 0x1e9   : > { %v2313_v30 = vpop.f32.mrf.mxu1  ;;  %v2602_v53 = vpop.f32.mrf.mxu0  ;;  %v4737_v62 = vld [vmem:[%s5128_s2 + $0x524] ss:$24 sps:$4 sm:$0xff]  }
 0x1ea   : > { %v3121_v3 = vadd.f32 %v5509_v58, %v3050_v46  ;;  %v2601_v54 = vadd.f32 %v2600_v23, %v2312_v0 }
 0x1eb   : > { %v2314_v5 = vpop.f32.mrf.mxu1  ;;  %v2603_v50 = vpop.f32.mrf.mxu0 }
 0x1ec   : > { %v3185_v19 = vmax.f32 %v3121_v3, 0.0  ;;  %v3051_v32 = vmul.f32 %v5501_v34, %v2601_v54  ;;  %v2315_v35 = vadd.f32 %v2314_v5, %v5324_v39 }
 0x1ed   : > { %v2316_v44 = vpop.f32.mrf.mxu1  ;;  %v2605_v56 = vpop.f32.mrf.mxu0 }
 0x1ee   : > { %v4103_v30 = vpack.c.bf16 %v3185_v19, %v3184_v17  ;;  %v2604_v53 = vadd.f32 %v2603_v50, %v2315_v35  ;;  %v3122_v7 = vadd.f32 %v5509_v58, %v3051_v32 }
 0x1ef   : > { %v2319_v38 = vpop.f32.mrf.mxu1  ;;  %2510 = vmatmul.mubr.bf16.gmra.mxu1 %v4726_v24  ;;  %v2608_v23 = vpop.f32.mrf.mxu0  ;;  %2799 = vmatmul.mubr.bf16.gmra.mxu0 %v4729_v11  ;;  %v4732_v24 = vld [vmem:[%s5128_s2 + $0x518] ss:$24 sps:$4 sm:$0xff]  }
 0x1f0   : > { %4104 = vst [vmem:[%s5522_s25] sm:$0xff] %v4103_v30   ;;  %v3052_v39 = vmul.f32 %v5501_v34, %v2604_v53  ;;  %v2320_v44 = vadd.f32 %v2319_v38, %v5332_v47  ;;  %2517 = vmatprep.mubr.bf16.mxu1 %v4734_v42  ;;  %2806 = vmatprep.mubr.bf16.mxu0 %v4737_v62  ;;  %v4735_v11 = vld [vmem:[%s5128_s2 + $0x520] ss:$24 sps:$4 sm:$0xff]   ;;  %v3186_v17 = vmax.f32 %v3122_v7, 0.0  ;;  %v4740_v47 = vld [vmem:[%s5128_s2 + $0x54c] ss:$24 sps:$4 sm:$0xff]  }
 0x1f1   : > { %v2321_v46 = vpop.f32.mrf.mxu1  ;;  %v2610_v0 = vpop.f32.mrf.mxu0  ;;  %v4743_v38 = vld [vmem:[%s5128_s2 + $0x554] ss:$24 sps:$4 sm:$0xff]  }
 0x1f2   : > { %v3123_v3 = vadd.f32 %v5509_v58, %v3052_v39  ;;  %v2609_v54 = vadd.f32 %v2608_v23, %v2320_v44 }
 0x1f3   : > { %v2322_v5 = vpop.f32.mrf.mxu1  ;;  %v2611_v50 = vpop.f32.mrf.mxu0 }
 0x1f4   : > { %v3187_v19 = vmax.f32 %v3123_v3, 0.0  ;;  %v3053_v32 = vmul.f32 %v5501_v34, %v2609_v54  ;;  %v2323_v35 = vadd.f32 %v2322_v5, %v5336_v51 }
 0x1f5   : > { %v2324_v42 = vpop.f32.mrf.mxu1  ;;  %v2613_v62 = vpop.f32.mrf.mxu0 }
 0x1f6   : > { %v4108_v56 = vpack.c.bf16 %v3187_v19, %v3186_v17  ;;  %v2612_v30 = vadd.f32 %v2611_v50, %v2323_v35  ;;  %v3124_v7 = vadd.f32 %v5509_v58, %v3053_v32  ;;  %v4738_v50 = vld [vmem:[%s5128_s2 + $0x548] ss:$24 sps:$4 sm:$0xff]   ;;  %v4749_v35 = vld [vmem:[%s5128_s2 + $0x584] ss:$24 sps:$4 sm:$0xff]  }
 0x1f7   : > { %v2327_v53 = vpop.f32.mrf.mxu1  ;;  %2518 = vmatmul.mubr.bf16.gmra.mxu1 %v4732_v24  ;;  %v2616_v23 = vpop.f32.mrf.mxu0  ;;  %2807 = vmatmul.mubr.bf16.gmra.mxu0 %v4735_v11  ;;  %v4741_v24 = vld [vmem:[%s5128_s2 + $0x550] ss:$24 sps:$4 sm:$0xff]  }
 0x1f8   : > { %4260 = vst [vmem:[%s5522_s25 + $0x8] sm:$0xff] %v4108_v56   ;;  %v3054_v39 = vmul.f32 %v5501_v34, %v2612_v30  ;;  %v2328_v51 = vadd.f32 %v2327_v53, %v5344_v59  ;;  %2525 = vmatprep.mubr.bf16.mxu1 %v4740_v47  ;;  %2814 = vmatprep.mubr.bf16.mxu0 %v4743_v38  ;;  %v3188_v11 = vmax.f32 %v3124_v7, 0.0  ;;  %v4746_v59 = vld [vmem:[%s5128_s2 + $0x57c] ss:$24 sps:$4 sm:$0xff]  }
 0x1f9   : > { %v2329_v44 = vpop.f32.mrf.mxu1  ;;  %v2618_v46 = vpop.f32.mrf.mxu0 }
 0x1fa   : > { %v3125_v0 = vadd.f32 %v5509_v58, %v3054_v39  ;;  %v2617_v3 = vadd.f32 %v2616_v23, %v2328_v51 }
 0x1fb   : > { %v2330_v54 = vpop.f32.mrf.mxu1  ;;  %v2619_v5 = vpop.f32.mrf.mxu0 }
 0x1fc   : > { %v3189_v17 = vmax.f32 %v3125_v0, 0.0  ;;  %v3055_v19 = vmul.f32 %v5501_v34, %v2617_v3  ;;  %v2331_v32 = vadd.f32 %v2330_v54, %v5348_v63  ;;  %v4744_v3 = vld [vmem:[%s5128_s2 + $0x578] ss:$24 sps:$4 sm:$0xff]  }
 0x1fd   : > { %v2332_v47 = vpop.f32.mrf.mxu1  ;;  %v2621_v38 = vpop.f32.mrf.mxu0  ;;  %v4747_v54 = vld [vmem:[%s5128_s2 + $0x580] ss:$24 sps:$4 sm:$0xff]  }
 0x1fe   : > { %v4113_v42 = vpack.c.bf16 %v3189_v17, %v3188_v11  ;;  %v2620_v62 = vadd.f32 %v2619_v5, %v2331_v32  ;;  %v3126_v53 = vadd.f32 %v5509_v58, %v3055_v19  ;;  %v4755_v17 = vld [vmem:[%s5128_s2 + $0x5b4] ss:$24 sps:$4 sm:$0xff]  }
 0x1ff   : > { %v2335_v56 = vpop.f32.mrf.mxu1  ;;  %2526 = vmatmul.mubr.bf16.gmra.mxu1 %v4738_v50  ;;  %v2624_v30 = vpop.f32.mrf.mxu0  ;;  %2815 = vmatmul.mubr.bf16.gmra.mxu0 %v4741_v24 }
 0x200   : > { %4261 = vst [vmem:[%s5522_s25 + $0x10] sm:$0xff] %v4113_v42   ;;  %v3056_v23 = vmul.f32 %v5501_v34, %v2620_v62  ;;  %v2336_v63 = vadd.f32 %v2335_v56, %v5356_v8  ;;  %2533 = vmatprep.mubr.bf16.mxu1 %v4746_v59  ;;  %2822 = vmatprep.mubr.bf16.mxu0 %v4749_v35  ;;  %v3190_v5 = vmax.f32 %v3126_v53, 0.0  ;;  %v4752_v8 = vld [vmem:[%s5128_s2 + $0x5ac] ss:$24 sps:$4 sm:$0xff]  }
 0x201   : > { %v2337_v7 = vpop.f32.mrf.mxu1  ;;  %v2626_v39 = vpop.f32.mrf.mxu0 }
 0x202   : > { %v3127_v51 = vadd.f32 %v5509_v58, %v3056_v23  ;;  %v2625_v44 = vadd.f32 %v2624_v30, %v2336_v63  ;;  %v4750_v39 = vld [vmem:[%s5128_s2 + $0x5a8] ss:$24 sps:$4 sm:$0xff]  }
 0x203   : > { %v2338_v46 = vpop.f32.mrf.mxu1  ;;  %v2627_v0 = vpop.f32.mrf.mxu0 }
 0x204   : > { %v3191_v50 = vmax.f32 %v3127_v51, 0.0  ;;  %v3057_v24 = vmul.f32 %v5501_v34, %v2625_v44  ;;  %v2339_v11 = vadd.f32 %v2338_v46, %v5360_v12  ;;  %v4753_v51 = vld [vmem:[%s5128_s2 + $0x5b0] ss:$24 sps:$4 sm:$0xff]  }
 0x205   : > { %v2340_v19 = vpop.f32.mrf.mxu1  ;;  %v2629_v32 = vpop.f32.mrf.mxu0 }
 0x206   : > { %v4118_v59 = vpack.c.bf16 %v3191_v50, %v3190_v5  ;;  %v2628_v35 = vadd.f32 %v2627_v0, %v2339_v11  ;;  %v3128_v42 = vadd.f32 %v5509_v58, %v3057_v24 }
 0x207   : > { %v2343_v47 = vpop.f32.mrf.mxu1  ;;  %2534 = vmatmul.mubr.bf16.gmra.mxu1 %v4744_v3  ;;  %v2632_v38 = vpop.f32.mrf.mxu0  ;;  %2823 = vmatmul.mubr.bf16.gmra.mxu0 %v4747_v54  ;;  %v4761_v54 = vld [vmem:[%s5128_s2 + $0x5e4] ss:$24 sps:$4 sm:$0xff]  }
 0x208   : > { %4262 = vst [vmem:[%s5522_s25 + $0x18] sm:$0xff] %v4118_v59   ;;  %v3058_v62 = vmul.f32 %v5501_v34, %v2628_v35  ;;  %v2344_v12 = vadd.f32 %v2343_v47, %v5368_v20  ;;  %2541 = vmatprep.mubr.bf16.mxu1 %v4752_v8  ;;  %2830 = vmatprep.mubr.bf16.mxu0 %v4755_v17  ;;  %v3192_v44 = vmax.f32 %v3128_v42, 0.0  ;;  %v4758_v20 = vld [vmem:[%s5128_s2 + $0x5dc] ss:$24 sps:$4 sm:$0xff]  }
 0x209   : > { %v2345_v56 = vpop.f32.mrf.mxu1  ;;  %v2634_v30 = vpop.f32.mrf.mxu0 }
 0x20a   : > { %v3129_v53 = vadd.f32 %v5509_v58, %v3058_v62  ;;  %v2633_v23 = vadd.f32 %v2632_v38, %v2344_v12  ;;  %v4756_v12 = vld [vmem:[%s5128_s2 + $0x5d8] ss:$24 sps:$4 sm:$0xff]  }
 0x20b   : > { %v2346_v63 = vpop.f32.mrf.mxu1  ;;  %v2635_v7 = vpop.f32.mrf.mxu0  ;;  %v4759_v56 = vld [vmem:[%s5128_s2 + $0x5e0] ss:$24 sps:$4 sm:$0xff]  }
 0x20c   : > { %v3193_v46 = vmax.f32 %v3129_v53, 0.0  ;;  %v3059_v0 = vmul.f32 %v5501_v34, %v2633_v23  ;;  %v2347_v3 = vadd.f32 %v2346_v63, %v5372_v26 }
 0x20d   : > { %v2348_v5 = vpop.f32.mrf.mxu1  ;;  %v2637_v50 = vpop.f32.mrf.mxu0 }
 0x20e   : > { %v4123_v24 = vpack.c.bf16 %v3193_v46, %v3192_v44  ;;  %v2636_v11 = vadd.f32 %v2635_v7, %v2347_v3  ;;  %v3130_v19 = vadd.f32 %v5509_v58, %v3059_v0 }
 0x20f   : > { %v2351_v8 = vpop.f32.mrf.mxu1  ;;  %2542 = vmatmul.mubr.bf16.gmra.mxu1 %v4750_v39  ;;  %v2640_v17 = vpop.f32.mrf.mxu0  ;;  %2831 = vmatmul.mubr.bf16.gmra.mxu0 %v4753_v51 }
 0x210   : > { %4263 = vst [vmem:[%s5522_s25 + $0x20] sm:$0xff] %v4123_v24   ;;  %v3060_v32 = vmul.f32 %v5501_v34, %v2636_v11  ;;  %v2352_v59 = vadd.f32 %v2351_v8, %v5380_v37  ;;  %2549 = vmatprep.mubr.bf16.mxu1 %v4758_v20  ;;  %2838 = vmatprep.mubr.bf16.mxu0 %v4761_v54  ;;  %v3194_v30 = vmax.f32 %v3130_v19, 0.0 }
 0x211   : > { %v2353_v26 = vpop.f32.mrf.mxu1  ;;  %v2642_v35 = vpop.f32.mrf.mxu0 }
 0x212   : > { %v3131_v47 = vadd.f32 %v5509_v58, %v3060_v32  ;;  %v2641_v38 = vadd.f32 %v2640_v17, %v2352_v59 }
 0x213   : > { %v2354_v42 = vpop.f32.mrf.mxu1  ;;  %v2643_v62 = vpop.f32.mrf.mxu0 }
 0x214   : > { %v3195_v53 = vmax.f32 %v3131_v47, 0.0  ;;  %v3061_v23 = vmul.f32 %v5501_v34, %v2641_v38  ;;  %v2355_v63 = vadd.f32 %v2354_v42, %v5384_v43 }
 0x215   : > { %v2356_v7 = vpop.f32.mrf.mxu1  ;;  %v2645_v37 = vpop.f32.mrf.mxu0 }
 0x216   : > { %v4128_v39 = vpack.c.bf16 %v3195_v53, %v3194_v30  ;;  %v2644_v51 = vadd.f32 %v2643_v62, %v2355_v63  ;;  %v3132_v0 = vadd.f32 %v5509_v58, %v3061_v23 }
 0x217   : > { %v2359_v44 = vpop.f32.mrf.mxu1  ;;  %2550 = vmatmul.mubr.bf16.gmra.mxu1 %v4756_v12  ;;  %v2648_v46 = vpop.f32.mrf.mxu0  ;;  %2839 = vmatmul.mubr.bf16.gmra.mxu0 %v4759_v56 }
 0x218   : > { %4264 = vst [vmem:[%s5522_s25 + $0x28] sm:$0xff] %v4128_v39   ;;  %v3062_v3 = vmul.f32 %v5501_v34, %v2644_v51  ;;  %v2360_v20 = vadd.f32 %v2359_v44, %v5392_v55  ;;  %v3196_v8 = vmax.f32 %v3132_v0, 0.0 }
 0x219   : > { %v2361_v54 = vpop.f32.mrf.mxu1  ;;  %v2650_v5 = vpop.f32.mrf.mxu0 }
 0x21a   : > { %v3133_v43 = vadd.f32 %v5509_v58, %v3062_v3  ;;  %v2649_v50 = vadd.f32 %v2648_v46, %v2360_v20 }
 0x21b   : > { %v2362_v24 = vpop.f32.mrf.mxu1  ;;  %v2651_v11 = vpop.f32.mrf.mxu0 }
 0x21c   : > { %v3197_v17 = vmax.f32 %v3133_v43, 0.0  ;;  %v3063_v19 = vmul.f32 %v5501_v34, %v2649_v50  ;;  %v2363_v32 = vadd.f32 %v2362_v24, %v5396_v61 }
 0x21d   : > { %v2364_v59 = vpop.f32.mrf.mxu1  ;;  %v2653_v26 = vpop.f32.mrf.mxu0 }
 0x21e   : > { %v4133_v35 = vpack.c.bf16 %v3197_v17, %v3196_v8  ;;  %v2652_v47 = vadd.f32 %v2651_v11, %v2363_v32  ;;  %v3134_v42 = vadd.f32 %v5509_v58, %v3063_v19 }
 0x21f   : > { %v2367_v38 = vpop.f32.mrf.mxu1  ;;  %v2656_v55 = vpop.f32.mrf.mxu0 }
 0x220   : > { %4265 = vst [vmem:[%s5522_s25 + $0x30] sm:$0xff] %v4133_v35   ;;  %v3064_v62 = vmul.f32 %v5501_v34, %v2652_v47  ;;  %v2368_v12 = vadd.f32 %v2367_v38, %v5404_v10  ;;  %v3198_v7 = vmax.f32 %v3134_v42, 0.0 }
 0x221   : > { %v2369_v56 = vpop.f32.mrf.mxu1  ;;  %v2658_v30 = vpop.f32.mrf.mxu0 }
 0x222   : > { %v3135_v53 = vadd.f32 %v5509_v58, %v3064_v62  ;;  %v2657_v23 = vadd.f32 %v2656_v55, %v2368_v12 }
 0x223   : > { %v2370_v61 = vpop.f32.mrf.mxu1  ;;  %v2659_v63 = vpop.f32.mrf.mxu0 }
 0x224   : > { %v3199_v37 = vmax.f32 %v3135_v53, 0.0  ;;  %v3065_v39 = vmul.f32 %v5501_v34, %v2657_v23  ;;  %v2371_v51 = vadd.f32 %v2370_v61, %v5408_v16 }
 0x225   : > { %v2372_v44 = vpop.f32.mrf.mxu1  ;;  %v2661_v46 = vpop.f32.mrf.mxu0 }
 0x226   : > { %v4138_v0 = vpack.c.bf16 %v3199_v37, %v3198_v7  ;;  %v2660_v3 = vadd.f32 %v2659_v63, %v2371_v51  ;;  %v3136_v54 = vadd.f32 %v5509_v58, %v3065_v39 }
 0x227   : > { %v2375_v20 = vpop.f32.mrf.mxu1  ;;  %v2664_v10 = vpop.f32.mrf.mxu0 }
 0x228   : > { %4266 = vst [vmem:[%s5522_s25 + $0x38] sm:$0xff] %v4138_v0   ;;  %v3066_v5 = vmul.f32 %v5501_v34, %v2660_v3  ;;  %v2376_v43 = vadd.f32 %v2375_v20, %v5416_v31  ;;  %v3200_v19 = vmax.f32 %v3136_v54, 0.0 }
 0x229   : > { %v2377_v50 = vpop.f32.mrf.mxu1  ;;  %v2666_v24 = vpop.f32.mrf.mxu0 }
 0x22a   : > { %v3137_v11 = vadd.f32 %v5509_v58, %v3066_v5  ;;  %v2665_v8 = vadd.f32 %v2664_v10, %v2376_v43 }
 0x22b   : > { %v2378_v16 = vpop.f32.mrf.mxu1  ;;  %v2667_v17 = vpop.f32.mrf.mxu0 }
 0x22c   : > { %v3201_v32 = vmax.f32 %v3137_v11, 0.0  ;;  %v3067_v59 = vmul.f32 %v5501_v34, %v2665_v8  ;;  %v2379_v26 = vadd.f32 %v2378_v16, %v5420_v41 }
 0x22d   : > { %v2380_v35 = vpop.f32.mrf.mxu1  ;;  %v2669_v47 = vpop.f32.mrf.mxu0 }
 0x22e   : > { %v4143_v38 = vpack.c.bf16 %v3201_v32, %v3200_v19  ;;  %v2668_v55 = vadd.f32 %v2667_v17, %v2379_v26  ;;  %v3138_v62 = vadd.f32 %v5509_v58, %v3067_v59 }
 0x22f   : > { %v2383_v42 = vpop.f32.mrf.mxu1  ;;  %v2672_v31 = vpop.f32.mrf.mxu0 }
 0x230   : > { %4267 = vst [vmem:[%s5522_s25 + $0x40] sm:$0xff] %v4143_v38   ;;  %v3068_v12 = vmul.f32 %v5501_v34, %v2668_v55  ;;  %v2384_v56 = vadd.f32 %v2383_v42, %v5428_v57  ;;  %v3202_v7 = vmax.f32 %v3138_v62, 0.0 }
 0x231   : > { %v2385_v30 = vpop.f32.mrf.mxu1  ;;  %v2674_v53 = vpop.f32.mrf.mxu0 }
 0x232   : > { %v3139_v23 = vadd.f32 %v5509_v58, %v3068_v12  ;;  %v2673_v61 = vadd.f32 %v2672_v31, %v2384_v56 }
 0x233   : > { %v2386_v41 = vpop.f32.mrf.mxu1  ;;  %v2675_v63 = vpop.f32.mrf.mxu0 }
 0x234   : > { %v3203_v37 = vmax.f32 %v3139_v23, 0.0  ;;  %v3069_v39 = vmul.f32 %v5501_v34, %v2673_v61  ;;  %v2387_v51 = vadd.f32 %v2386_v41, %v5432_v4 }
 0x235   : > { %v2388_v44 = vpop.f32.mrf.mxu1  ;;  %v2677_v46 = vpop.f32.mrf.mxu0 }
 0x236   : > { %v4148_v0 = vpack.c.bf16 %v3203_v37, %v3202_v7  ;;  %v2676_v3 = vadd.f32 %v2675_v63, %v2387_v51  ;;  %v3140_v10 = vadd.f32 %v5509_v58, %v3069_v39 }
 0x237   : > { %v2391_v20 = vpop.f32.mrf.mxu1  ;;  %v2680_v57 = vpop.f32.mrf.mxu0 }
 0x238   : > { %4268 = vst [vmem:[%s5522_s25 + $0x48] sm:$0xff] %v4148_v0   ;;  %v3070_v54 = vmul.f32 %v5501_v34, %v2676_v3  ;;  %v2392_v5 = vadd.f32 %v2391_v20, %v5440_v22  ;;  %v3204_v16 = vmax.f32 %v3140_v10, 0.0 }
 0x239   : > { %v2393_v43 = vpop.f32.mrf.mxu1  ;;  %v2682_v50 = vpop.f32.mrf.mxu0 }
 0x23a   : > { %v3141_v24 = vadd.f32 %v5509_v58, %v3070_v54  ;;  %v2681_v11 = vadd.f32 %v2680_v57, %v2392_v5 }
 0x23b   : > { %v2394_v4 = vpop.f32.mrf.mxu1  ;;  %v2683_v8 = vpop.f32.mrf.mxu0 }
 0x23c   : > { %v3205_v17 = vmax.f32 %v3141_v24, 0.0  ;;  %v3071_v19 = vmul.f32 %v5501_v34, %v2681_v11  ;;  %v2395_v32 = vadd.f32 %v2394_v4, %v5444_v33 }
 0x23d   : > { %v2396_v59 = vpop.f32.mrf.mxu1  ;;  %v2685_v26 = vpop.f32.mrf.mxu0 }
 0x23e   : > { %v4153_v35 = vpack.c.bf16 %v3205_v17, %v3204_v16  ;;  %v2684_v47 = vadd.f32 %v2683_v8, %v2395_v32  ;;  %v3142_v55 = vadd.f32 %v5509_v58, %v3071_v19 }
 0x23f   : > { %v2399_v38 = vpop.f32.mrf.mxu1  ;;  %v2688_v22 = vpop.f32.mrf.mxu0 }
 0x240   : > { %4269 = vst [vmem:[%s5522_s25 + $0x50] sm:$0xff] %v4153_v35   ;;  %v3072_v42 = vmul.f32 %v5501_v34, %v2684_v47  ;;  %v2400_v31 = vadd.f32 %v2399_v38, %v5452_v2  ;;  %v3206_v23 = vmax.f32 %v3142_v55, 0.0 }
 0x241   : > { %v2401_v62 = vpop.f32.mrf.mxu1  ;;  %v2690_v12 = vpop.f32.mrf.mxu0 }
 0x242   : > { %v3143_v56 = vadd.f32 %v5509_v58, %v3072_v42  ;;  %v2689_v30 = vadd.f32 %v2688_v22, %v2400_v31 }
 0x243   : > { %v2402_v33 = vpop.f32.mrf.mxu1  ;;  %v2691_v53 = vpop.f32.mrf.mxu0 }
 0x244   : > { %v3207_v61 = vmax.f32 %v3143_v56, 0.0  ;;  %v3073_v41 = vmul.f32 %v5501_v34, %v2689_v30  ;;  %v2403_v63 = vadd.f32 %v2402_v33, %v5456_v14 }
 0x245   : > { %v2404_v7 = vpop.f32.mrf.mxu1  ;;  %v2693_v37 = vpop.f32.mrf.mxu0 }
 0x246   : > { %v4158_v39 = vpack.c.bf16 %v3207_v61, %v3206_v23  ;;  %v2692_v51 = vadd.f32 %v2691_v53, %v2403_v63  ;;  %v3144_v46 = vadd.f32 %v5509_v58, %v3073_v41 }
 0x247   : > { %v2407_v44 = vpop.f32.mrf.mxu1  ;;  %v2696_v2 = vpop.f32.mrf.mxu0 }
 0x248   : > { %4270 = vst [vmem:[%s5522_s25 + $0x58] sm:$0xff] %v4158_v39   ;;  %v3074_v0 = vmul.f32 %v5501_v34, %v2692_v51  ;;  %v2408_v3 = vadd.f32 %v2407_v44, %v5464_v45  ;;  %v3208_v43 = vmax.f32 %v3144_v46, 0.0 }
 0x249   : > { %v2409_v20 = vpop.f32.mrf.mxu1  ;;  %v2698_v57 = vpop.f32.mrf.mxu0 }
 0x24a   : > { %v3145_v10 = vadd.f32 %v5509_v58, %v3074_v0  ;;  %v2697_v54 = vadd.f32 %v2696_v2, %v2408_v3 }
 0x24b   : > { %v2410_v14 = vpop.f32.mrf.mxu1  ;;  %v2699_v5 = vpop.f32.mrf.mxu0 }
 0x24c   : > { %v3209_v50 = vmax.f32 %v3145_v10, 0.0  ;;  %v3075_v24 = vmul.f32 %v5501_v34, %v2697_v54  ;;  %v2411_v11 = vadd.f32 %v2410_v14, %v5468_v6 }
 0x24d   : > { %v2412_v4 = vpop.f32.mrf.mxu1  ;;  %v2701_v8 = vpop.f32.mrf.mxu0 }
 0x24e   : > { %v4163_v16 = vpack.c.bf16 %v3209_v50, %v3208_v43  ;;  %v2700_v17 = vadd.f32 %v2699_v5, %v2411_v11  ;;  %v3146_v32 = vadd.f32 %v5509_v58, %v3075_v24 }
 0x24f   : > { %v2415_v19 = vpop.f32.mrf.mxu1  ;;  %v2704_v45 = vpop.f32.mrf.mxu0 }
 0x250   : > { %4271 = vst [vmem:[%s5522_s25 + $0x60] sm:$0xff] %v4163_v16   ;;  %v3076_v59 = vmul.f32 %v5501_v34, %v2700_v17  ;;  %v2416_v26 = vadd.f32 %v2415_v19, %v5476_v18  ;;  %v3210_v42 = vmax.f32 %v3146_v32, 0.0 }
 0x251   : > { %v2417_v35 = vpop.f32.mrf.mxu1  ;;  %v2706_v47 = vpop.f32.mrf.mxu0 }
 0x252   : > { %v3147_v38 = vadd.f32 %v5509_v58, %v3076_v59  ;;  %v2705_v22 = vadd.f32 %v2704_v45, %v2416_v26 }
 0x253   : > { %v2418_v6 = vpop.f32.mrf.mxu1  ;;  %v2707_v55 = vpop.f32.mrf.mxu0 }
 0x254   : > { %v3211_v31 = vmax.f32 %v3147_v38, 0.0  ;;  %v3077_v62 = vmul.f32 %v5501_v34, %v2705_v22  ;;  %v2419_v12 = vadd.f32 %v2418_v6, %v5480_v49 }
 0x255   : > { %v2420_v56 = vpop.f32.mrf.mxu1  ;;  %v2709_v30 = vpop.f32.mrf.mxu0 }
 0x256   : > { %v4168_v33 = vpack.c.bf16 %v3211_v31, %v3210_v42  ;;  %v2708_v53 = vadd.f32 %v2707_v55, %v2419_v12  ;;  %v3148_v61 = vadd.f32 %v5509_v58, %v3077_v62 }
 0x257   : > { %v2423_v23 = vpop.f32.mrf.mxu1  ;;  %v2712_v18 = vpop.f32.mrf.mxu0 }
 0x258   : > { %4272 = vst [vmem:[%s5522_s25 + $0x68] sm:$0xff] %v4168_v33   ;;  %v3078_v41 = vmul.f32 %v5501_v34, %v2708_v53  ;;  %v2424_v63 = vadd.f32 %v2423_v23, %v5488_v15  ;;  %v3212_v2 = vmax.f32 %v3148_v61, 0.0 }
 0x259   : > { %v2425_v7 = vpop.f32.mrf.mxu1  ;;  %v2714_v37 = vpop.f32.mrf.mxu0 }
 0x25a   : > { %v3149_v39 = vadd.f32 %v5509_v58, %v3078_v41  ;;  %v2713_v51 = vadd.f32 %v2712_v18, %v2424_v63 }
 0x25b   : > { %v2426_v49 = vpop.f32.mrf.mxu1  ;;  %v2715_v44 = vpop.f32.mrf.mxu0 }
 0x25c   : > { %v3213_v46 = vmax.f32 %v3149_v39, 0.0  ;;  %v3079_v0 = vmul.f32 %v5501_v34, %v2713_v51  ;;  %v2427_v3 = vadd.f32 %v2426_v49, %v5492_v29 }
 0x25d   : > { %v2428_v20 = vpop.f32.mrf.mxu1  ;;  %v2717_v57 = vpop.f32.mrf.mxu0 }
 0x25e   : > { %v4173_v10 = vpack.c.bf16 %v3213_v46, %v3212_v2  ;;  %v2716_v54 = vadd.f32 %v2715_v44, %v2427_v3  ;;  %v3150_v5 = vadd.f32 %v5509_v58, %v3079_v0 }
 0x25f   : > { %v2431_v14 = vpop.f32.mrf.mxu1  ;;  %v2720_v15 = vpop.f32.mrf.mxu0 }
 0x260   : > { %4273 = vst [vmem:[%s5522_s25 + $0x70] sm:$0xff] %v4173_v10   ;;  %v3080_v43 = vmul.f32 %v5501_v34, %v2716_v54  ;;  %v2432_v50 = vadd.f32 %v2431_v14, %v5310_v25  ;;  %v3214_v17 = vmax.f32 %v3150_v5, 0.0 }
 0x261   : > { %v2433_v24 = vpop.f32.mrf.mxu1  ;;  %v2722_v11 = vpop.f32.mrf.mxu0 }
 0x262   : > { %v3151_v4 = vadd.f32 %v5509_v58, %v3080_v43  ;;  %v2721_v8 = vadd.f32 %v2720_v15, %v2432_v50 }
 0x263   : > { %v2434_v29 = vpop.f32.mrf.mxu1  ;;  %v2723_v16 = vpop.f32.mrf.mxu0 }
 0x264   : > { %v3215_v19 = vmax.f32 %v3151_v4, 0.0  ;;  %v3081_v45 = vmul.f32 %v5501_v34, %v2721_v8  ;;  %v2435_v32 = vadd.f32 %v2434_v29, %v5314_v28 }
 0x265   : > { %v2436_v59 = vpop.f32.mrf.mxu1  ;;  %v2725_v26 = vpop.f32.mrf.mxu0 }
 0x266   : > { %v4178_v35 = vpack.c.bf16 %v3215_v19, %v3214_v17  ;;  %v2724_v47 = vadd.f32 %v2723_v16, %v2435_v32  ;;  %v3152_v22 = vadd.f32 %v5509_v58, %v3081_v45 }
 0x267   : > { %v2439_v38 = vpop.f32.mrf.mxu1  ;;  %v2728_v25 = vpop.f32.mrf.mxu0 }
 0x268   : > { %4274 = vst [vmem:[%s5522_s25 + $0x78] sm:$0xff] %v4178_v35   ;;  %v3082_v6 = vmul.f32 %v5501_v34, %v2724_v47  ;;  %v2440_v55 = vadd.f32 %v2439_v38, %v5322_v36  ;;  %v3216_v30 = vmax.f32 %v3152_v22, 0.0 }
 0x269   : > { %v2441_v42 = vpop.f32.mrf.mxu1  ;;  %v2730_v31 = vpop.f32.mrf.mxu0 }
 0x26a   : > { %v3153_v62 = vadd.f32 %v5509_v58, %v3082_v6  ;;  %v2729_v12 = vadd.f32 %v2728_v25, %v2440_v55 }
 0x26b   : > { %v2442_v28 = vpop.f32.mrf.mxu1  ;;  %v2731_v56 = vpop.f32.mrf.mxu0 }
 0x26c   : > { %v3217_v33 = vmax.f32 %v3153_v62, 0.0  ;;  %v3083_v53 = vmul.f32 %v5501_v34, %v2729_v12  ;;  %v2443_v23 = vadd.f32 %v2442_v28, %v5326_v40 }
 0x26d   : > { %v2444_v18 = vpop.f32.mrf.mxu1  ;;  %v2733_v61 = vpop.f32.mrf.mxu0 }
 0x26e   : > { %v4183_v41 = vpack.c.bf16 %v3217_v33, %v3216_v30  ;;  %v2732_v63 = vadd.f32 %v2731_v56, %v2443_v23  ;;  %v3154_v37 = vadd.f32 %v5509_v58, %v3083_v53 }
 0x26f   : > { %v2447_v7 = vpop.f32.mrf.mxu1  ;;  %v2736_v36 = vpop.f32.mrf.mxu0 }
 0x270   : > { %4275 = vst [vmem:[%s5522_s25 + $0x80] sm:$0xff] %v4183_v41   ;;  %v3084_v39 = vmul.f32 %v5501_v34, %v2732_v63  ;;  %v2448_v51 = vadd.f32 %v2447_v7, %v5334_v48  ;;  %v3218_v3 = vmax.f32 %v3154_v37, 0.0 }
 0x271   : > { %v2449_v49 = vpop.f32.mrf.mxu1  ;;  %v2738_v44 = vpop.f32.mrf.mxu0 }
 0x272   : > { %v3155_v2 = vadd.f32 %v5509_v58, %v3084_v39  ;;  %v2737_v46 = vadd.f32 %v2736_v36, %v2448_v51 }
 0x273   : > { %v2450_v40 = vpop.f32.mrf.mxu1  ;;  %v2739_v0 = vpop.f32.mrf.mxu0 }
 0x274   : > { %v3219_v20 = vmax.f32 %v3155_v2, 0.0  ;;  %v3085_v57 = vmul.f32 %v5501_v34, %v2737_v46  ;;  %v2451_v10 = vadd.f32 %v2450_v40, %v5338_v52 }
 0x275   : > { %v2452_v54 = vpop.f32.mrf.mxu1  ;;  %v2741_v14 = vpop.f32.mrf.mxu0 }
 0x276   : > { %v4188_v15 = vpack.c.bf16 %v3219_v20, %v3218_v3  ;;  %v2740_v5 = vadd.f32 %v2739_v0, %v2451_v10  ;;  %v3156_v50 = vadd.f32 %v5509_v58, %v3085_v57 }
 0x277   : > { %v2455_v43 = vpop.f32.mrf.mxu1  ;;  %v2744_v48 = vpop.f32.mrf.mxu0 }
 0x278   : > { %4276 = vst [vmem:[%s5522_s25 + $0x88] sm:$0xff] %v4188_v15   ;;  %v3086_v24 = vmul.f32 %v5501_v34, %v2740_v5  ;;  %v2456_v11 = vadd.f32 %v2455_v43, %v5346_v60  ;;  %v3220_v19 = vmax.f32 %v3156_v50, 0.0  ;;  %v5857_v43 = vld [vmem:[#allocation16_spill] sm:$0xff] }
 0x279   : > { %v2457_v4 = vpop.f32.mrf.mxu1  ;;  %v2746_v8 = vpop.f32.mrf.mxu0 }
 0x27a   : > { %v3157_v29 = vadd.f32 %v5509_v58, %v3086_v24  ;;  %v2745_v16 = vadd.f32 %v2744_v48, %v2456_v11 }
 0x27b   : > { %v2458_v52 = vpop.f32.mrf.mxu1  ;;  %v2747_v17 = vpop.f32.mrf.mxu0 }
 0x27c   : > { %v3221_v45 = vmax.f32 %v3157_v29, 0.0  ;;  %v3087_v32 = vmul.f32 %v5501_v34, %v2745_v16  ;;  %v2459_v59 = vadd.f32 %v2458_v52, %v5350_v1 }
 0x27d   : > { %v2460_v26 = vpop.f32.mrf.mxu1  ;;  %v2749_v35 = vpop.f32.mrf.mxu0 }
 0x27e   : > { %v4193_v47 = vpack.c.bf16 %v3221_v45, %v3220_v19  ;;  %v2748_v38 = vadd.f32 %v2747_v17, %v2459_v59  ;;  %v3158_v22 = vadd.f32 %v5509_v58, %v3087_v32  ;;  %v5858_v17 = vld [vmem:[#allocation17_spill] sm:$0xff] }
 0x27f   : > { %v2463_v25 = vpop.f32.mrf.mxu1  ;;  %v2752_v60 = vpop.f32.mrf.mxu0 }
 0x280   : > { %4277 = vst [vmem:[%s5522_s25 + $0x90] sm:$0xff] %v4193_v47   ;;  %v3088_v6 = vmul.f32 %v5501_v34, %v2748_v38  ;;  %v2464_v55 = vadd.f32 %v2463_v25, %v5358_v9  ;;  %v3222_v56 = vmax.f32 %v3158_v22, 0.0 }
 0x281   : > { %v2465_v42 = vpop.f32.mrf.mxu1  ;;  %v2754_v31 = vpop.f32.mrf.mxu0 }
 0x282   : > { %v3159_v62 = vadd.f32 %v5509_v58, %v3088_v6  ;;  %v2753_v12 = vadd.f32 %v2752_v60, %v2464_v55  ;;  %v5859_v60 = vld [vmem:[#allocation18_spill] sm:$0xff] }
 0x283   : > { %v2466_v1 = vpop.f32.mrf.mxu1  ;;  %v2755_v28 = vpop.f32.mrf.mxu0 }
 0x284   : > { %v3223_v30 = vmax.f32 %v3159_v62, 0.0  ;;  %v3089_v33 = vmul.f32 %v5501_v34, %v2753_v12  ;;  %v2467_v53 = vadd.f32 %v2466_v1, %v5362_v13 }
 0x285   : > { %v2468_v23 = vpop.f32.mrf.mxu1  ;;  %v2757_v18 = vpop.f32.mrf.mxu0 }
 0x286   : > { %v4198_v61 = vpack.c.bf16 %v3223_v30, %v3222_v56  ;;  %v2756_v41 = vadd.f32 %v2755_v28, %v2467_v53  ;;  %v3160_v7 = vadd.f32 %v5509_v58, %v3089_v33  ;;  %v5694_v56 = vld [vmem:[#allocation8] ss:$0 sm:$0xff] }
 0x287   : > { %v2471_v63 = vpop.f32.mrf.mxu1  ;;  %v2760_v9 = vpop.f32.mrf.mxu0  ;;  %v5860_v33 = vld [vmem:[#allocation19_spill] sm:$0xff] }
 0x288   : > { %4278 = vst [vmem:[%s5522_s25 + $0x98] sm:$0xff] %v4198_v61   ;;  %v3090_v36 = vmul.f32 %v5501_v34, %v2756_v41  ;;  %v2472_v37 = vadd.f32 %v2471_v63, %v5370_v21  ;;  %v3224_v46 = vmax.f32 %v3160_v7, 0.0 }
 0x289   : > { %v2473_v39 = vpop.f32.mrf.mxu1  ;;  %v2762_v51 = vpop.f32.mrf.mxu0 }
 0x28a   : > { %v3161_v49 = vadd.f32 %v5509_v58, %v3090_v36  ;;  %v2761_v44 = vadd.f32 %v2760_v9, %v2472_v37  ;;  %v5699_v9 = vld [vmem:[#allocation9] ss:$0 sm:$0xff]  ;;  %v5861_v36 = vld [vmem:[#allocation20_spill] sm:$0xff] }
 0x28b   : > { %v2474_v13 = vpop.f32.mrf.mxu1  ;;  %v2763_v2 = vpop.f32.mrf.mxu0 }
 0x28c   : > { %v3225_v40 = vmax.f32 %v3161_v49, 0.0  ;;  %v3091_v0 = vmul.f32 %v5501_v34, %v2761_v44  ;;  %v2475_v3 = vadd.f32 %v2474_v13, %v5374_v27 }
 0x28d   : > { %v2476_v20 = vpop.f32.mrf.mxu1  ;;  %v2765_v57 = vpop.f32.mrf.mxu0 }
 0x28e   : > { %v4203_v10 = vpack.c.bf16 %v3225_v40, %v3224_v46  ;;  %v2764_v54 = vadd.f32 %v2763_v2, %v2475_v3  ;;  %v3162_v15 = vadd.f32 %v5509_v58, %v3091_v0  ;;  %v5862_v3 = vld [vmem:[#allocation21_spill] sm:$0xff] }
 0x28f   : > { %v2479_v14 = vpop.f32.mrf.mxu1  ;;  %v2768_v21 = vpop.f32.mrf.mxu0 }
 0x290   : > { %4279 = vst [vmem:[%s5522_s25 + $0xa0] sm:$0xff] %v4203_v10   ;;  %v3092_v5 = vmul.f32 %v5501_v34, %v2764_v54  ;;  %v2480_v48 = vadd.f32 %v2479_v14, %v5857_v43  ;;  %v3226_v29 = vmax.f32 %v3162_v15, 0.0 }
 0x291   : > { %v2481_v50 = vpop.f32.mrf.mxu1  ;;  %v2770_v24 = vpop.f32.mrf.mxu0 }
 0x292   : > { %v3163_v11 = vadd.f32 %v5509_v58, %v3092_v5  ;;  %v2769_v4 = vadd.f32 %v2768_v21, %v2480_v48  ;;  %v5863_v48 = vld [vmem:[#allocation22_spill] sm:$0xff] }
 0x293   : > { %v2482_v27 = vpop.f32.mrf.mxu1  ;;  %v2771_v8 = vpop.f32.mrf.mxu0 }
 0x294   : > { %v3227_v16 = vmax.f32 %v3163_v11, 0.0  ;;  %v3093_v52 = vmul.f32 %v5501_v34, %v2769_v4  ;;  %v2483_v19 = vadd.f32 %v2482_v27, %v5858_v17 }
 0x295   : > { %v2484_v45 = vpop.f32.mrf.mxu1  ;;  %v2773_v32 = vpop.f32.mrf.mxu0 }
 0x296   : > { %v4208_v59 = vpack.c.bf16 %v3227_v16, %v3226_v29  ;;  %v2772_v26 = vadd.f32 %v2771_v8, %v2483_v19  ;;  %v3164_v38 = vadd.f32 %v5509_v58, %v3093_v52  ;;  %v5864_v19 = vld [vmem:[#allocation23_spill] sm:$0xff] }
 0x297   : > { %v2487_v35 = vpop.f32.mrf.mxu1  ;;  %v2776_v47 = vpop.f32.mrf.mxu0 }
 0x298   : > { %4280 = vst [vmem:[%s5522_s25 + $0xa8] sm:$0xff] %v4208_v59   ;;  %v3094_v25 = vmul.f32 %v5501_v34, %v2772_v26  ;;  %v2488_v22 = vadd.f32 %v2487_v35, %v5859_v60  ;;  %v3228_v1 = vmax.f32 %v3164_v38, 0.0 }
 0x299   : > { %v2489_v6 = vpop.f32.mrf.mxu1  ;;  %v2778_v55 = vpop.f32.mrf.mxu0 }
 0x29a   : > { %v3165_v42 = vadd.f32 %v5509_v58, %v3094_v25  ;;  %v2777_v31 = vadd.f32 %v2776_v47, %v2488_v22  ;;  %v5865_v22 = vld [vmem:[#allocation24_spill] sm:$0xff] }
 0x29b   : > { %v2490_v62 = vpop.f32.mrf.mxu1  ;;  %v2779_v12 = vpop.f32.mrf.mxu0 }
 0x29c   : > { %v3229_v28 = vmax.f32 %v3165_v42, 0.0  ;;  %v3095_v30 = vmul.f32 %v5694_v56, %v2777_v31  ;;  %v2491_v53 = vadd.f32 %v2490_v62, %v5860_v33 }
 0x29d   : > { %v2492_v23 = vpop.f32.mrf.mxu1  ;;  %v2781_v34 = vpop.f32.mrf.mxu0 }
 0x29e   : > { %v4213_v18 = vpack.c.bf16 %v3229_v28, %v3228_v1  ;;  %v2780_v61 = vadd.f32 %v2779_v12, %v2491_v53  ;;  %v3166_v58 = vadd.f32 %v5699_v9, %v3095_v30  ;;  %v5866_v53 = vld [vmem:[#allocation25_spill] sm:$0xff] }
 0x29f   : > { %v2495_v41 = vpop.f32.mrf.mxu1  ;;  %v2784_v63 = vpop.f32.mrf.mxu0 }
 0x2a0   : > { %4281 = vst [vmem:[%s5522_s25 + $0xb0] sm:$0xff] %v4213_v18   ;;  %v3096_v7 = vmul.f32 %v5694_v56, %v2780_v61  ;;  %v2496_v37 = vadd.f32 %v2495_v41, %v5861_v36  ;;  %v3230_v46 = vmax.f32 %v3166_v58, 0.0 }
 0x2a1   : > { %v2497_v39 = vpop.f32.mrf.mxu1  ;;  %v2786_v51 = vpop.f32.mrf.mxu0 }
 0x2a2   : > { %v3167_v49 = vadd.f32 %v5699_v9, %v3096_v7  ;;  %v2785_v44 = vadd.f32 %v2784_v63, %v2496_v37  ;;  %v5867_v37 = vld [vmem:[#allocation26_spill] sm:$0xff] }
 0x2a3   : > { %v2498_v13 = vpop.f32.mrf.mxu1  ;;  %v2787_v2 = vpop.f32.mrf.mxu0 }
 0x2a4   : > { %v3231_v40 = vmax.f32 %v3167_v49, 0.0  ;;  %v3097_v0 = vmul.f32 %v5694_v56, %v2785_v44  ;;  %v2499_v20 = vadd.f32 %v2498_v13, %v5862_v3 }
 0x2a5   : > { %v2500_v57 = vpop.f32.mrf.mxu1  ;;  %v2789_v10 = vpop.f32.mrf.mxu0 }
 0x2a6   : > { %v4218_v54 = vpack.c.bf16 %v3231_v40, %v3230_v46  ;;  %v2788_v14 = vadd.f32 %v2787_v2, %v2499_v20  ;;  %v3168_v5 = vadd.f32 %v5699_v9, %v3097_v0  ;;  %v5868_v20 = vld [vmem:[#allocation27_spill] sm:$0xff] }
 0x2a7   : > { %v2503_v21 = vpop.f32.mrf.mxu1  ;;  %v2792_v15 = vpop.f32.mrf.mxu0 }
 0x2a8   : > { %4282 = vst [vmem:[%s5522_s25 + $0xb8] sm:$0xff] %v4218_v54   ;;  %v3098_v43 = vmul.f32 %v5694_v56, %v2788_v14  ;;  %v2504_v50 = vadd.f32 %v2503_v21, %v5863_v48  ;;  %v3232_v16 = vmax.f32 %v3168_v5, 0.0 }
 0x2a9   : > { %v2505_v24 = vpop.f32.mrf.mxu1  ;;  %v2794_v11 = vpop.f32.mrf.mxu0 }
 0x2aa   : > { %v3169_v4 = vadd.f32 %v5699_v9, %v3098_v43  ;;  %v2793_v27 = vadd.f32 %v2792_v15, %v2504_v50  ;;  %v5869_v50 = vld [vmem:[#allocation28_spill] sm:$0xff] }
 0x2ab   : > { %v2506_v8 = vpop.f32.mrf.mxu1  ;;  %v2795_v29 = vpop.f32.mrf.mxu0 }
 0x2ac   : > { %v3233_v52 = vmax.f32 %v3169_v4, 0.0  ;;  %v3099_v17 = vmul.f32 %v5694_v56, %v2793_v27  ;;  %v2507_v45 = vadd.f32 %v2506_v8, %v5864_v19 }
 0x2ad   : > { %v2508_v32 = vpop.f32.mrf.mxu1  ;;  %v2797_v59 = vpop.f32.mrf.mxu0 }
 0x2ae   : > { %v4223_v26 = vpack.c.bf16 %v3233_v52, %v3232_v16  ;;  %v2796_v35 = vadd.f32 %v2795_v29, %v2507_v45  ;;  %v3170_v25 = vadd.f32 %v5699_v9, %v3099_v17  ;;  %v5870_v45 = vld [vmem:[#allocation29_spill] sm:$0xff] }
 0x2af   : > { %v2511_v47 = vpop.f32.mrf.mxu1  ;;  %v2800_v38 = vpop.f32.mrf.mxu0 }
 0x2b0   : > { %4283 = vst [vmem:[%s5522_s25 + $0xc0] sm:$0xff] %v4223_v26   ;;  %v3100_v60 = vmul.f32 %v5694_v56, %v2796_v35  ;;  %v2512_v6 = vadd.f32 %v2511_v47, %v5865_v22  ;;  %v3234_v28 = vmax.f32 %v3170_v25, 0.0 }
 0x2b1   : > { %v2513_v55 = vpop.f32.mrf.mxu1  ;;  %v2802_v42 = vpop.f32.mrf.mxu0 }
 0x2b2   : > { %v3171_v31 = vadd.f32 %v5699_v9, %v3100_v60  ;;  %v2801_v62 = vadd.f32 %v2800_v38, %v2512_v6  ;;  %v5871_v6 = vld [vmem:[#allocation30_spill] sm:$0xff] }
 0x2b3   : > { %v2514_v12 = vpop.f32.mrf.mxu1  ;;  %v2803_v1 = vpop.f32.mrf.mxu0 }
 0x2b4   : > { %v3235_v30 = vmax.f32 %v3171_v31, 0.0  ;;  %v3101_v33 = vmul.f32 %v5694_v56, %v2801_v62  ;;  %v2515_v23 = vadd.f32 %v2514_v12, %v5866_v53 }
 0x2b5   : > { %v2516_v34 = vpop.f32.mrf.mxu1  ;;  %v2805_v18 = vpop.f32.mrf.mxu0 }
 0x2b6   : > { %v4228_v61 = vpack.c.bf16 %v3235_v30, %v3234_v28  ;;  %v2804_v41 = vadd.f32 %v2803_v1, %v2515_v23  ;;  %v3172_v7 = vadd.f32 %v5699_v9, %v3101_v33  ;;  %v5872_v23 = vld [vmem:[#allocation31_spill] sm:$0xff] }
 0x2b7   : > { %v2519_v63 = vpop.f32.mrf.mxu1  ;;  %v2808_v58 = vpop.f32.mrf.mxu0 }
 0x2b8   : > { %4284 = vst [vmem:[%s5522_s25 + $0xc8] sm:$0xff] %v4228_v61   ;;  %v3102_v36 = vmul.f32 %v5694_v56, %v2804_v41  ;;  %v2520_v39 = vadd.f32 %v2519_v63, %v5867_v37  ;;  %v3236_v40 = vmax.f32 %v3172_v7, 0.0 }
 0x2b9   : > { %v2521_v51 = vpop.f32.mrf.mxu1  ;;  %v2810_v49 = vpop.f32.mrf.mxu0 }
 0x2ba   : > { %v3173_v44 = vadd.f32 %v5699_v9, %v3102_v36  ;;  %v2809_v13 = vadd.f32 %v2808_v58, %v2520_v39  ;;  %v5873_v39 = vld [vmem:[#allocation32_spill] sm:$0xff] }
 0x2bb   : > { %v2522_v2 = vpop.f32.mrf.mxu1  ;;  %v2811_v46 = vpop.f32.mrf.mxu0 }
 0x2bc   : > { %v3237_v0 = vmax.f32 %v3173_v44, 0.0  ;;  %v3103_v3 = vmul.f32 %v5694_v56, %v2809_v13  ;;  %v2523_v57 = vadd.f32 %v2522_v2, %v5868_v20 }
 0x2bd   : > { %v2524_v10 = vpop.f32.mrf.mxu1  ;;  %v2813_v54 = vpop.f32.mrf.mxu0 }
 0x2be   : > { %v4233_v14 = vpack.c.bf16 %v3237_v0, %v3236_v40  ;;  %v2812_v21 = vadd.f32 %v2811_v46, %v2523_v57  ;;  %v3174_v43 = vadd.f32 %v5699_v9, %v3103_v3  ;;  %v5874_v57 = vld [vmem:[#allocation33_spill] sm:$0xff] }
 0x2bf   : > { %v2527_v15 = vpop.f32.mrf.mxu1  ;;  %v2816_v5 = vpop.f32.mrf.mxu0 }
 0x2c0   : > { %4285 = vst [vmem:[%s5522_s25 + $0xd0] sm:$0xff] %v4233_v14   ;;  %v3104_v48 = vmul.f32 %v5694_v56, %v2812_v21  ;;  %v2528_v24 = vadd.f32 %v2527_v15, %v5869_v50  ;;  %v3238_v52 = vmax.f32 %v3174_v43, 0.0 }
 0x2c1   : > { %v2529_v11 = vpop.f32.mrf.mxu1  ;;  %v2818_v4 = vpop.f32.mrf.mxu0 }
 0x2c2   : > { %v3175_v27 = vadd.f32 %v5699_v9, %v3104_v48  ;;  %v2817_v8 = vadd.f32 %v2816_v5, %v2528_v24  ;;  %v5875_v24 = vld [vmem:[#allocation34_spill] sm:$0xff] }
 0x2c3   : > { %v2530_v29 = vpop.f32.mrf.mxu1  ;;  %v2819_v16 = vpop.f32.mrf.mxu0 }
 0x2c4   : > { %v3239_v17 = vmax.f32 %v3175_v27, 0.0  ;;  %v3105_v19 = vmul.f32 %v5694_v56, %v2817_v8  ;;  %v2531_v32 = vadd.f32 %v2530_v29, %v5870_v45 }
 0x2c5   : > { %v2532_v59 = vpop.f32.mrf.mxu1  ;;  %v2821_v26 = vpop.f32.mrf.mxu0 }
 0x2c6   : > { %v4238_v35 = vpack.c.bf16 %v3239_v17, %v3238_v52  ;;  %v2820_v47 = vadd.f32 %v2819_v16, %v2531_v32  ;;  %v3176_v60 = vadd.f32 %v5699_v9, %v3105_v19  ;;  %v5876_v32 = vld [vmem:[#allocation35_spill] sm:$0xff] }
 0x2c7   : > { %v2535_v38 = vpop.f32.mrf.mxu1  ;;  %v2824_v25 = vpop.f32.mrf.mxu0 }
 0x2c8   : > { %4286 = vst [vmem:[%s5522_s25 + $0xd8] sm:$0xff] %v4238_v35   ;;  %v3106_v22 = vmul.f32 %v5694_v56, %v2820_v47  ;;  %v2536_v55 = vadd.f32 %v2535_v38, %v5871_v6  ;;  %v3240_v30 = vmax.f32 %v3176_v60, 0.0 }
 0x2c9   : > { %v2537_v42 = vpop.f32.mrf.mxu1  ;;  %v2826_v31 = vpop.f32.mrf.mxu0 }
 0x2ca   : > { %v3177_v62 = vadd.f32 %v5699_v9, %v3106_v22  ;;  %v2825_v12 = vadd.f32 %v2824_v25, %v2536_v55 }
 0x2cb   : > { %v2538_v1 = vpop.f32.mrf.mxu1  ;;  %v2827_v28 = vpop.f32.mrf.mxu0 }
 0x2cc   : > { %v3241_v33 = vmax.f32 %v3177_v62, 0.0  ;;  %v3107_v53 = vmul.f32 %v5694_v56, %v2825_v12  ;;  %v2539_v34 = vadd.f32 %v2538_v1, %v5872_v23 }
 0x2cd   : > { %v2540_v18 = vpop.f32.mrf.mxu1  ;;  %v2829_v61 = vpop.f32.mrf.mxu0 }
 0x2ce   : > { %v4243_v41 = vpack.c.bf16 %v3241_v33, %v3240_v30  ;;  %v2828_v63 = vadd.f32 %v2827_v28, %v2539_v34  ;;  %v3178_v36 = vadd.f32 %v5699_v9, %v3107_v53 }
 0x2cf   : > { %v2543_v58 = vpop.f32.mrf.mxu1  ;;  %v2832_v7 = vpop.f32.mrf.mxu0 }
 0x2d0   : > { %4287 = vst [vmem:[%s5522_s25 + $0xe0] sm:$0xff] %v4243_v41   ;;  %v3108_v37 = vmul.f32 %v5694_v56, %v2828_v63  ;;  %v2544_v51 = vadd.f32 %v2543_v58, %v5873_v39  ;;  %v3242_v0 = vmax.f32 %v3178_v36, 0.0 }
 0x2d1   : > { %v2545_v49 = vpop.f32.mrf.mxu1  ;;  %v2834_v44 = vpop.f32.mrf.mxu0 }
 0x2d2   : > { %v3179_v13 = vadd.f32 %v5699_v9, %v3108_v37  ;;  %v2833_v2 = vadd.f32 %v2832_v7, %v2544_v51 }
 0x2d3   : > { %v2546_v46 = vpop.f32.mrf.mxu1  ;;  %v2835_v40 = vpop.f32.mrf.mxu0 }
 0x2d4   : > { %v3243_v3 = vmax.f32 %v3179_v13, 0.0  ;;  %v3109_v20 = vmul.f32 %v5694_v56, %v2833_v2  ;;  %v2547_v10 = vadd.f32 %v2546_v46, %v5874_v57 }
 0x2d5   : > { %v2548_v54 = vpop.f32.mrf.mxu1  ;;  %v2837_v14 = vpop.f32.mrf.mxu0 }
 0x2d6   : > { %v4248_v21 = vpack.c.bf16 %v3243_v3, %v3242_v0  ;;  %v2836_v15 = vadd.f32 %v2835_v40, %v2547_v10  ;;  %v3180_v48 = vadd.f32 %v5699_v9, %v3109_v20 }
 0x2d7   : > { %v2551_v5 = vpop.f32.mrf.mxu1  ;;  %v2840_v43 = vpop.f32.mrf.mxu0 }
 0x2d8   : > { %4288 = vst [vmem:[%s5522_s25 + $0xe8] sm:$0xff] %v4248_v21   ;;  %v3110_v50 = vmul.f32 %v5694_v56, %v2836_v15  ;;  %v2552_v11 = vadd.f32 %v2551_v5, %v5875_v24  ;;  %v3244_v17 = vmax.f32 %v3180_v48, 0.0 }
 0x2d9   : > { %v2553_v4 = vpop.f32.mrf.mxu1  ;;  %v2842_v27 = vpop.f32.mrf.mxu0 }
 0x2da   : > { %v3181_v8 = vadd.f32 %v5699_v9, %v3110_v50  ;;  %v2841_v29 = vadd.f32 %v2840_v43, %v2552_v11 }
 0x2db   : > { %v2554_v16 = vpop.f32.mrf.mxu1  ;;  %v2843_v52 = vpop.f32.mrf.mxu0 }
 0x2dc   : > { %v3245_v19 = vmax.f32 %v3181_v8, 0.0  ;;  %v3111_v45 = vmul.f32 %v5694_v56, %v2841_v29  ;;  %v2555_v59 = vadd.f32 %v2554_v16, %v5876_v32 }
 0x2dd   : > { %v2556_v26 = vpop.f32.mrf.mxu1  ;;  %v2845_v35 = vpop.f32.mrf.mxu0 }
 0x2de   : > { %v4253_v47 = vpack.c.bf16 %v3245_v19, %v3244_v17  ;;  %v2844_v38 = vadd.f32 %v2843_v52, %v2555_v59  ;;  %v3182_v25 = vadd.f32 %v5699_v9, %v3111_v45 }
 0x2e0   : > { %4289 = vst [vmem:[%s5522_s25 + $0xf0] sm:$0xff] %v4253_v47   ;;  %v3112_v60 = vmul.f32 %v5694_v56, %v2844_v38  ;;  %v3246_v6 = vmax.f32 %v3182_v25, 0.0 }
 0x2e2   : > { %v3183_v22 = vadd.f32 %v5699_v9, %v3112_v60 }
 0x2e4   : > { %v3247_v55 = vmax.f32 %v3183_v22, 0.0 }
 0x2e6   : > { %v4258_v42 = vpack.c.bf16 %v3247_v55, %v3246_v6 }
 0x2e8   : > { %4290 = vst [vmem:[%s5522_s25 + $0xf8] sm:$0xff] %v4258_v42  }
 0x2e9   : > { %4883 = shalt.err (!%p4880_p1)
}
 0x2ea   : > { %s4884_s12 = scalar_lea.hbm %s5765_s28, 4096  ;;  %s4888_s13 = scalar_lea.hbm %s5819_s4, 32768 }
 0x2eb   : > { %p4885_p13 = scmp.ne.s32.totalorder %s5765_s28, %s4884_s12  ;;  %p4889_p3 = scmp.lt.s32.totalorder %s5765_s28, %s5819_s4 }
 0x2ec   : > { %p4890_p5 = scmp.lt.s32.totalorder %s4888_s13, %s4884_s12 }
 0x2ed   : > { %p4886_p4 = pnand %p4885_p13, %p5096_p0 }
 0x2ee   : > { %p4891_p7 = por %p4890_p5, %p4889_p3 }
 0x2ef   : > { %p4887_p11 = pneg %p4886_p4 }
 0x2f1   : > { %p4892_p8 = pnand %p4891_p7, %p4887_p11 }
 0x2f3   : > { %4895 = shalt.err (!%p4892_p8)
}
 0x2f4   : > { %s4970_s23 = smov 64   ;;  %s4971_s25 = smov 4  }
 0x2f5   : > { %4340 = dma.vmem_to_hbm [thread:$0]  (%p5096_p0), %s5767_s14, 4096, %s5765_s28, %s3569_s29, %s4970_s23, %s4970_s23, %s4971_s25  }
 0x2f6 PF: > { %p4367_p6 = scmp.ge.s32.totalorder %s4958_s20, 2  ;;  %s3598_s27 = sand.u32 1, %s4938_s15  }
 0x2f7   : > { %p5877_p10 = scmp.ne.s32.totalorder %s5828_s26, 0  ;;  %s3599_s21 = scalar_lea.sflag [#allocation5], %s3598_s27 }
 0x2f9   : > { %p4357_p2 = pnand %p4367_p6, %p5877_p10 }
 0x2fb   : > { %p4358_p9 = pneg %p4357_p2 }
 0x2fd   : > { %4933 = dma.done.wait (%p4358_p9), %s3599_s21, 4096  }
 0x2fe   : > { %4935 = vsyncadd (%p4358_p9), %s3599_s21, 4294963200  ;;  %s22_s20 = sadd.s32 1, %s4958_s20   ;;  %s5878_s15 = smov %s4942_s16 }
 0x2ff   : > { %p19_p12 = scmp.ge.s32.totalorder %s22_s20, 10   ;;  %s5879_s16 = smov %s4946_s17 }
 0x300   : > { %s5880_s17 = smov %s5112_s24  ;;  %s5881_s18 = smov %s4954_s19 }
 0x301   : > { %s5882_s19 = smov %s5884_s10  ;;  %21 = sbr.rel (!%p19_p12) target bundleno = 11 (0xb), region = 104 }
 0x306   :  { %3604 = vsyncpa [#allocation4], 1 }
 0x307   :  { %3606 = vsyncpa [#allocation4 + $0x1], 1 }
 0x308   :  { %3607 = vsyncpa [#allocation7], 1 }
 0x309   :  { %3608 = vsyncpa [#allocation10], 1 }
 0x30a   :  { %3609 = vsyncpa [#allocation5], 1 }
 0x30b   :  { %3611 = vsyncpa [#allocation5 + $0x1], 1 }

</bundles_post_ra>
